<compile_context>
chip_gen: v6e
topology: v6e:2x2x1
jax: 0.10.0
libtpu: 0.0.40
codegen_flags: <defaults>
</compile_context>

<pallas_src>
import jax
import jax.numpy as jnp
from jax.experimental import pallas as pl
from jax.experimental.pallas import tpu as pltpu


# ----------------------------- fused Pallas kernel ---------------------------
def _fused_net_kernel(x_ref, t1_ref, b1_ref, t2_ref, b2_ref,
                      fw1_ref, fb1_ref, fw2_ref, fb2_ref, o_ref):
    # x_ref : (1, 4, 7, 28)  image rows pre-split by residue mod 4:
    #                        x_ref[0, c, a, :] == image[4*a + c, :]
    # t1_ref: (140, 240)     conv1 banded matrix, rows kh*28+iw, cols ow*10+co
    # b1_ref: (1, 240)       conv1 bias tiled over ow
    # t2_ref: (600, 160)     conv2 banded matrix, rows kh*120+iw*10+ci, cols ow*20+co
    # b2_ref: (1, 160)
    # fw1_ref:(320, 50)      fc1 weight, rows permuted to (oh, ow, c) order
    # fb1_ref:(1, 50)  fw2_ref:(50, 10)  fb2_ref:(1, 10)
    # o_ref : (1, 1, 10)     log-probabilities for this image
    f32 = jnp.float32

    # ---- conv1: output rows grouped by residue (mod 4) so 2x2 pooling
    # ---- becomes plain elementwise max of row blocks.
    xs = [x_ref[0, c, :, :] for c in range(4)]            # 4 x (7, 28)

    def x_slab(r):                                        # output rows r, r+4, ..., r+20
        parts = []
        for kh in range(5):
            t = r + kh
            parts.append(xs[t % 4][t // 4:t // 4 + 6, :])  # (6, 28)
        return jnp.concatenate(parts, axis=1)              # (6, 140)

    xc1 = jnp.concatenate([x_slab(0), x_slab(1), x_slab(2), x_slab(3)],
                          axis=0)                           # (24, 140)
    y1 = jnp.dot(xc1, t1_ref[...], preferred_element_type=f32) + b1_ref[...]  # (24, 240)

    # ---- 2x2 max-pool (H by row-block max, W by lane-block max) + ReLU
    def wpool_relu(v, ch, nw):
        parts = [jnp.maximum(v[:, (2 * b) * ch:(2 * b + 1) * ch],
                             v[:, (2 * b + 1) * ch:(2 * b + 2) * ch])
                 for b in range(nw // 2)]
        return jnp.maximum(jnp.concatenate(parts, axis=1), 0.0)

    h_even = jnp.maximum(y1[0:6, :], y1[6:12, :])          # pooled rows oh = 0,2,...,10
    h_odd = jnp.maximum(y1[12:18, :], y1[18:24, :])        # pooled rows oh = 1,3,...,11
    p_even = wpool_relu(h_even, 10, 24)                    # (6, 120), lanes ow*10+c
    p_odd = wpool_relu(h_odd, 10, 24)                      # (6, 120)

    # ---- conv2 (nn.Dropout2d is identity in eval mode)
    # TODO(synk): training-mode Dropout2d / F.dropout not implemented (inference only).
    def x_slab2(parity):                                   # conv2 output rows 2a+parity
        parts = []
        for kh in range(5):
            if parity == 0:
                src = p_even if kh % 2 == 0 else p_odd
                s0 = kh // 2
            else:
                src = p_odd if kh % 2 == 0 else p_even
                s0 = kh // 2 if kh % 2 == 0 else kh // 2 + 1
            parts.append(src[s0:s0 + 4, :])                # (4, 120)
        return jnp.concatenate(parts, axis=1)              # (4, 600)

    xc2 = jnp.concatenate([x_slab2(0), x_slab2(1)], axis=0)                    # (8, 600)
    y2 = jnp.dot(xc2, t2_ref[...], preferred_element_type=f32) + b2_ref[...]   # (8, 160)

    z = jnp.maximum(y2[0:4, :], y2[4:8, :])                # H-pool -> rows oh2 = 0..3
    z = wpool_relu(z, 20, 8)                               # (4, 80), lanes ow*20+c

    # ---- flatten (oh, ow, c) order, fc1 -> relu -> fc2 -> log_softmax
    zflat = jnp.concatenate([z[r:r + 1, :] for r in range(4)], axis=1)          # (1, 320)
    h = jnp.dot(zflat, fw1_ref[...], preferred_element_type=f32) + fb1_ref[...]
    h = jnp.maximum(h, 0.0)                                                     # (1, 50)
    logits = jnp.dot(h, fw2_ref[...], preferred_element_type=f32) + fb2_ref[...]  # (1, 10)
    m = jnp.max(logits, axis=-1, keepdims=True)
    s = logits - m
    lse = jnp.log(jnp.sum(jnp.exp(s), axis=-1, keepdims=True))
    o_ref[0] = s - lse


# ------------------------- wrapper-side weight plumbing -----------------------
def _conv1_banded(w1):
    # (10, 1, 5, 5) -> (140, 240): T[kh*28+iw, ow*10+co] = w1[co,0,kh,iw-ow]
    wk = jnp.transpose(w1[:, 0, :, :], (1, 2, 0))          # (kh, kw, co)
    iw = jnp.arange(28)[:, None]
    ow = jnp.arange(24)[None, :]
    dk = iw - ow
    valid = (dk >= 0) & (dk < 5)
    t = wk[:, jnp.clip(dk, 0, 4), :]                       # (5, 28, 24, 10)
    t = jnp.where(valid[None, :, :, None], t, 0.0)
    return t.reshape(140, 240)


def _conv2_banded(w2):
    # (20, 10, 5, 5) -> (600, 160): T[kh*120+iw*10+ci, ow*20+co] = w2[co,ci,kh,iw-ow]
    wk = jnp.transpose(w2, (2, 1, 3, 0))                   # (kh, ci, kw, co)
    iw = jnp.arange(12)[:, None]
    ow = jnp.arange(8)[None, :]
    dk = iw - ow
    valid = (dk >= 0) & (dk < 5)
    t = wk[:, :, jnp.clip(dk, 0, 4), :]                    # (5, 10, 12, 8, 20)
    t = jnp.where(valid[None, None, :, :, None], t, 0.0)
    t = jnp.transpose(t, (0, 2, 1, 3, 4))                  # (kh, iw, ci, ow, co)
    return t.reshape(600, 160)


@jax.jit
def net_forward(params, x):
    n = x.shape[0]
    # Tiny layout plumbing (fuses into the parameter feed): split input rows
    # by residue mod 4, bake conv weights into banded matrices, pre-permute
    # fc1 weight to absorb the flatten order, tile biases over lanes.
    xs = x[:, 0, :, :].reshape(n, 7, 4, 28).transpose(0, 2, 1, 3)   # (N, 4, 7, 28)
    t1 = _conv1_banded(params["conv1_w"])
    b1 = jnp.tile(params["conv1_b"], 24).reshape(1, 240)
    t2 = _conv2_banded(params["conv2_w"])
    b2 = jnp.tile(params["conv2_b"], 8).reshape(1, 160)
    fw1 = params["fc1_w"].reshape(50, 20, 4, 4).transpose(2, 3, 1, 0).reshape(320, 50)
    fb1 = params["fc1_b"].reshape(1, 50)
    fw2 = params["fc2_w"].T
    fb2 = params["fc2_b"].reshape(1, 10)

    out = pl.pallas_call(
        _fused_net_kernel,
        out_shape=jax.ShapeDtypeStruct((n, 1, 10), jnp.float32),
        grid=(n,),
        in_specs=[
            pl.BlockSpec((1, 4, 7, 28), lambda i: (i, 0, 0, 0)),
            pl.BlockSpec((140, 240), lambda i: (0, 0)),
            pl.BlockSpec((1, 240), lambda i: (0, 0)),
            pl.BlockSpec((600, 160), lambda i: (0, 0)),
            pl.BlockSpec((1, 160), lambda i: (0, 0)),
            pl.BlockSpec((320, 50), lambda i: (0, 0)),
            pl.BlockSpec((1, 50), lambda i: (0, 0)),
            pl.BlockSpec((50, 10), lambda i: (0, 0)),
            pl.BlockSpec((1, 10), lambda i: (0, 0)),
        ],
        out_specs=pl.BlockSpec((1, 1, 10), lambda i: (i, 0, 0)),
        compiler_params=pltpu.CompilerParams(
            dimension_semantics=("parallel",)),
    )(xs, t1, b1, t2, b2, fw1, fb1, fw2, fb2)
    return out.reshape(n, 10)


# --------------------------------- reference ----------------------------------
def init_params(key):
    ks = jax.random.split(key, 8)

    def u(k, shape, fan_in):
        bound = 1.0 / (fan_in ** 0.5)
        return jax.random.uniform(k, shape, jnp.float32, -bound, bound)

    return {
        "conv1_w": u(ks[0], (10, 1, 5, 5), 1 * 25),
        "conv1_b": u(ks[1], (10,), 1 * 25),
        "conv2_w": u(ks[2], (20, 10, 5, 5), 10 * 25),
        "conv2_b": u(ks[3], (20,), 10 * 25),
        "fc1_w": u(ks[4], (50, 320), 320),
        "fc1_b": u(ks[5], (50,), 320),
        "fc2_w": u(ks[6], (10, 50), 50),
        "fc2_b": u(ks[7], (10,), 50),
    }


def ref_forward(params, x):
    dn = ("NCHW", "OIHW", "NCHW")
    hp = jax.lax.Precision.HIGHEST
    y = jax.lax.conv_general_dilated(x, params["conv1_w"], (1, 1), "VALID",
                                     dimension_numbers=dn, precision=hp)
    y = y + params["conv1_b"][None, :, None, None]
    y = jax.lax.reduce_window(y, -jnp.inf, jax.lax.max, (1, 1, 2, 2),
                              (1, 1, 2, 2), "VALID")
    y = jnp.maximum(y, 0.0)
    y = jax.lax.conv_general_dilated(y, params["conv2_w"], (1, 1), "VALID",
                                     dimension_numbers=dn, precision=hp)
    y = y + params["conv2_b"][None, :, None, None]
    y = jax.lax.reduce_window(y, -jnp.inf, jax.lax.max, (1, 1, 2, 2),
                              (1, 1, 2, 2), "VALID")
    y = jnp.maximum(y, 0.0)
    y = y.reshape(-1, 320)
    y = jnp.maximum(jnp.dot(y, params["fc1_w"].T, precision=hp) + params["fc1_b"], 0.0)
    y = jnp.dot(y, params["fc2_w"].T, precision=hp) + params["fc2_b"]
    return jax.nn.log_softmax(y, axis=1)


if __name__ == "__main__":
    key = jax.random.PRNGKey(0)
    pk, xk = jax.random.split(key)
    params = init_params(pk)
    # MNIST-shaped input (28x28 is required for view(-1, 320) to hold)
    x = jax.random.normal(xk, (2, 1, 28, 28), jnp.float32)

    out = jax.block_until_ready(net_forward(params, x))
    ref = jax.block_until_ready(ref_forward(params, x))

    assert out.shape == (2, 10), out.shape
    assert jnp.allclose(out, ref, atol=2e-3, rtol=2e-3), \
        float(jnp.max(jnp.abs(out - ref)))
    print("KERNEL_OK")
</pallas_src>

<mosaic_0001>
module attributes {stable_mosaic.version = 11 : i64} {
  func.func @_fused_net_kernel(%arg0: i32, %arg1: memref<1x4x7x28xf32, #tpu.memory_space<vmem>>, %arg2: memref<140x240xf32, #tpu.memory_space<vmem>>, %arg3: memref<1x240xf32, #tpu.memory_space<vmem>>, %arg4: memref<600x160xf32, #tpu.memory_space<vmem>>, %arg5: memref<1x160xf32, #tpu.memory_space<vmem>>, %arg6: memref<320x50xf32, #tpu.memory_space<vmem>>, %arg7: memref<1x50xf32, #tpu.memory_space<vmem>>, %arg8: memref<50x10xf32, #tpu.memory_space<vmem>>, %arg9: memref<1x10xf32, #tpu.memory_space<vmem>>, %arg10: memref<1x1x10xf32, #tpu.memory_space<vmem>>) attributes {dimension_semantics = [#tpu.dimension_semantics<parallel>], iteration_bounds = array<i64: 2>, scalar_prefetch = 0 : i64, scratch_operands = 0 : i64, tpu.core_type = #tpu.core_type<tc>, window_params = [{transform_indices = @transform_0, window_bounds = array<i64: 1, 4, 7, 28>}, {pipeline_mode = #tpu.pipeline_mode<synchronous>, transform_indices = @transform_1, window_bounds = array<i64: 140, 240>}, {pipeline_mode = #tpu.pipeline_mode<synchronous>, transform_indices = @transform_2, window_bounds = array<i64: 1, 240>}, {pipeline_mode = #tpu.pipeline_mode<synchronous>, transform_indices = @transform_3, window_bounds = array<i64: 600, 160>}, {pipeline_mode = #tpu.pipeline_mode<synchronous>, transform_indices = @transform_4, window_bounds = array<i64: 1, 160>}, {pipeline_mode = #tpu.pipeline_mode<synchronous>, transform_indices = @transform_5, window_bounds = array<i64: 320, 50>}, {pipeline_mode = #tpu.pipeline_mode<synchronous>, transform_indices = @transform_6, window_bounds = array<i64: 1, 50>}, {pipeline_mode = #tpu.pipeline_mode<synchronous>, transform_indices = @transform_7, window_bounds = array<i64: 50, 10>}, {pipeline_mode = #tpu.pipeline_mode<synchronous>, transform_indices = @transform_8, window_bounds = array<i64: 1, 10>}, {transform_indices = @transform_9, window_bounds = array<i64: 1, 1, 10>}]} {
    %c0 = arith.constant 0 : index
    %c0_0 = arith.constant 0 : index
    %c0_1 = arith.constant 0 : index
    %c0_2 = arith.constant 0 : index
    %0 = vector.load %arg1[%c0, %c0_0, %c0_1, %c0_2] : memref<1x4x7x28xf32, #tpu.memory_space<vmem>>, vector<1x1x7x28xf32>
    %1 = vector.shape_cast %0 : vector<1x1x7x28xf32> to vector<7x28xf32>
    %c0_3 = arith.constant 0 : index
    %c1 = arith.constant 1 : index
    %c0_4 = arith.constant 0 : index
    %c0_5 = arith.constant 0 : index
    %2 = vector.load %arg1[%c0_3, %c1, %c0_4, %c0_5] : memref<1x4x7x28xf32, #tpu.memory_space<vmem>>, vector<1x1x7x28xf32>
    %3 = vector.shape_cast %2 : vector<1x1x7x28xf32> to vector<7x28xf32>
    %c0_6 = arith.constant 0 : index
    %c2 = arith.constant 2 : index
    %c0_7 = arith.constant 0 : index
    %c0_8 = arith.constant 0 : index
    %4 = vector.load %arg1[%c0_6, %c2, %c0_7, %c0_8] : memref<1x4x7x28xf32, #tpu.memory_space<vmem>>, vector<1x1x7x28xf32>
    %5 = vector.shape_cast %4 : vector<1x1x7x28xf32> to vector<7x28xf32>
    %c0_9 = arith.constant 0 : index
    %c3 = arith.constant 3 : index
    %c0_10 = arith.constant 0 : index
    %c0_11 = arith.constant 0 : index
    %6 = vector.load %arg1[%c0_9, %c3, %c0_10, %c0_11] : memref<1x4x7x28xf32, #tpu.memory_space<vmem>>, vector<1x1x7x28xf32>
    %7 = vector.shape_cast %6 : vector<1x1x7x28xf32> to vector<7x28xf32>
    %8 = vector.extract_strided_slice %1 {offsets = [0, 0], sizes = [6, 28], strides = [1, 1]} : vector<7x28xf32> to vector<6x28xf32>
    %9 = vector.extract_strided_slice %3 {offsets = [0, 0], sizes = [6, 28], strides = [1, 1]} : vector<7x28xf32> to vector<6x28xf32>
    %10 = vector.extract_strided_slice %5 {offsets = [0, 0], sizes = [6, 28], strides = [1, 1]} : vector<7x28xf32> to vector<6x28xf32>
    %11 = vector.extract_strided_slice %7 {offsets = [0, 0], sizes = [6, 28], strides = [1, 1]} : vector<7x28xf32> to vector<6x28xf32>
    %12 = vector.extract_strided_slice %1 {offsets = [1, 0], sizes = [6, 28], strides = [1, 1]} : vector<7x28xf32> to vector<6x28xf32>
    %13 = tpu.concatenate %8, %9, %10, %11, %12 in 1 : vector<6x28xf32>, vector<6x28xf32>, vector<6x28xf32>, vector<6x28xf32>, vector<6x28xf32> -> vector<6x140xf32>
    %14 = vector.extract_strided_slice %3 {offsets = [0, 0], sizes = [6, 28], strides = [1, 1]} : vector<7x28xf32> to vector<6x28xf32>
    %15 = vector.extract_strided_slice %5 {offsets = [0, 0], sizes = [6, 28], strides = [1, 1]} : vector<7x28xf32> to vector<6x28xf32>
    %16 = vector.extract_strided_slice %7 {offsets = [0, 0], sizes = [6, 28], strides = [1, 1]} : vector<7x28xf32> to vector<6x28xf32>
    %17 = vector.extract_strided_slice %1 {offsets = [1, 0], sizes = [6, 28], strides = [1, 1]} : vector<7x28xf32> to vector<6x28xf32>
    %18 = vector.extract_strided_slice %3 {offsets = [1, 0], sizes = [6, 28], strides = [1, 1]} : vector<7x28xf32> to vector<6x28xf32>
    %19 = tpu.concatenate %14, %15, %16, %17, %18 in 1 : vector<6x28xf32>, vector<6x28xf32>, vector<6x28xf32>, vector<6x28xf32>, vector<6x28xf32> -> vector<6x140xf32>
    %20 = vector.extract_strided_slice %5 {offsets = [0, 0], sizes = [6, 28], strides = [1, 1]} : vector<7x28xf32> to vector<6x28xf32>
    %21 = vector.extract_strided_slice %7 {offsets = [0, 0], sizes = [6, 28], strides = [1, 1]} : vector<7x28xf32> to vector<6x28xf32>
    %22 = vector.extract_strided_slice %1 {offsets = [1, 0], sizes = [6, 28], strides = [1, 1]} : vector<7x28xf32> to vector<6x28xf32>
    %23 = vector.extract_strided_slice %3 {offsets = [1, 0], sizes = [6, 28], strides = [1, 1]} : vector<7x28xf32> to vector<6x28xf32>
    %24 = vector.extract_strided_slice %5 {offsets = [1, 0], sizes = [6, 28], strides = [1, 1]} : vector<7x28xf32> to vector<6x28xf32>
    %25 = tpu.concatenate %20, %21, %22, %23, %24 in 1 : vector<6x28xf32>, vector<6x28xf32>, vector<6x28xf32>, vector<6x28xf32>, vector<6x28xf32> -> vector<6x140xf32>
    %26 = vector.extract_strided_slice %7 {offsets = [0, 0], sizes = [6, 28], strides = [1, 1]} : vector<7x28xf32> to vector<6x28xf32>
    %27 = vector.extract_strided_slice %1 {offsets = [1, 0], sizes = [6, 28], strides = [1, 1]} : vector<7x28xf32> to vector<6x28xf32>
    %28 = vector.extract_strided_slice %3 {offsets = [1, 0], sizes = [6, 28], strides = [1, 1]} : vector<7x28xf32> to vector<6x28xf32>
    %29 = vector.extract_strided_slice %5 {offsets = [1, 0], sizes = [6, 28], strides = [1, 1]} : vector<7x28xf32> to vector<6x28xf32>
    %30 = vector.extract_strided_slice %7 {offsets = [1, 0], sizes = [6, 28], strides = [1, 1]} : vector<7x28xf32> to vector<6x28xf32>
    %31 = tpu.concatenate %26, %27, %28, %29, %30 in 1 : vector<6x28xf32>, vector<6x28xf32>, vector<6x28xf32>, vector<6x28xf32>, vector<6x28xf32> -> vector<6x140xf32>
    %32 = tpu.concatenate %13, %19, %25, %31 in 0 : vector<6x140xf32>, vector<6x140xf32>, vector<6x140xf32>, vector<6x140xf32> -> vector<24x140xf32>
    %c0_12 = arith.constant 0 : index
    %c0_13 = arith.constant 0 : index
    %33 = vector.load %arg2[%c0_12, %c0_13] : memref<140x240xf32, #tpu.memory_space<vmem>>, vector<140x240xf32>
    %cst = arith.constant dense<0.000000e+00> : vector<24x240xf32>
    %34 = tpu.matmul %32, %33, %cst {dimension_numbers = #tpu.dot_dimension_numbers<[1], [0], [0], [1], [0, 0, 1, 1], [], []>} : vector<24x140xf32>, vector<140x240xf32>, vector<24x240xf32> -> vector<24x240xf32>
    %c0_14 = arith.constant 0 : index
    %c0_15 = arith.constant 0 : index
    %35 = vector.load %arg3[%c0_14, %c0_15] : memref<1x240xf32, #tpu.memory_space<vmem>>, vector<1x240xf32>
    %36 = vector.broadcast %35 : vector<1x240xf32> to vector<24x240xf32>
    %37 = arith.addf %34, %36 : vector<24x240xf32>
    %38 = vector.extract_strided_slice %37 {offsets = [0, 0], sizes = [6, 240], strides = [1, 1]} : vector<24x240xf32> to vector<6x240xf32>
    %39 = vector.extract_strided_slice %37 {offsets = [6, 0], sizes = [6, 240], strides = [1, 1]} : vector<24x240xf32> to vector<6x240xf32>
    %40 = arith.maximumf %38, %39 : vector<6x240xf32>
    %41 = vector.extract_strided_slice %37 {offsets = [12, 0], sizes = [6, 240], strides = [1, 1]} : vector<24x240xf32> to vector<6x240xf32>
    %42 = vector.extract_strided_slice %37 {offsets = [18, 0], sizes = [6, 240], strides = [1, 1]} : vector<24x240xf32> to vector<6x240xf32>
    %43 = arith.maximumf %41, %42 : vector<6x240xf32>
    %44 = vector.extract_strided_slice %40 {offsets = [0, 0], sizes = [6, 10], strides = [1, 1]} : vector<6x240xf32> to vector<6x10xf32>
    %45 = vector.extract_strided_slice %40 {offsets = [0, 10], sizes = [6, 10], strides = [1, 1]} : vector<6x240xf32> to vector<6x10xf32>
    %46 = arith.maximumf %44, %45 : vector<6x10xf32>
    %47 = vector.extract_strided_slice %40 {offsets = [0, 20], sizes = [6, 10], strides = [1, 1]} : vector<6x240xf32> to vector<6x10xf32>
    %48 = vector.extract_strided_slice %40 {offsets = [0, 30], sizes = [6, 10], strides = [1, 1]} : vector<6x240xf32> to vector<6x10xf32>
    %49 = arith.maximumf %47, %48 : vector<6x10xf32>
    %50 = vector.extract_strided_slice %40 {offsets = [0, 40], sizes = [6, 10], strides = [1, 1]} : vector<6x240xf32> to vector<6x10xf32>
    %51 = vector.extract_strided_slice %40 {offsets = [0, 50], sizes = [6, 10], strides = [1, 1]} : vector<6x240xf32> to vector<6x10xf32>
    %52 = arith.maximumf %50, %51 : vector<6x10xf32>
    %53 = vector.extract_strided_slice %40 {offsets = [0, 60], sizes = [6, 10], strides = [1, 1]} : vector<6x240xf32> to vector<6x10xf32>
    %54 = vector.extract_strided_slice %40 {offsets = [0, 70], sizes = [6, 10], strides = [1, 1]} : vector<6x240xf32> to vector<6x10xf32>
    %55 = arith.maximumf %53, %54 : vector<6x10xf32>
    %56 = vector.extract_strided_slice %40 {offsets = [0, 80], sizes = [6, 10], strides = [1, 1]} : vector<6x240xf32> to vector<6x10xf32>
    %57 = vector.extract_strided_slice %40 {offsets = [0, 90], sizes = [6, 10], strides = [1, 1]} : vector<6x240xf32> to vector<6x10xf32>
    %58 = arith.maximumf %56, %57 : vector<6x10xf32>
    %59 = vector.extract_strided_slice %40 {offsets = [0, 100], sizes = [6, 10], strides = [1, 1]} : vector<6x240xf32> to vector<6x10xf32>
    %60 = vector.extract_strided_slice %40 {offsets = [0, 110], sizes = [6, 10], strides = [1, 1]} : vector<6x240xf32> to vector<6x10xf32>
    %61 = arith.maximumf %59, %60 : vector<6x10xf32>
    %62 = vector.extract_strided_slice %40 {offsets = [0, 120], sizes = [6, 10], strides = [1, 1]} : vector<6x240xf32> to vector<6x10xf32>
    %63 = vector.extract_strided_slice %40 {offsets = [0, 130], sizes = [6, 10], strides = [1, 1]} : vector<6x240xf32> to vector<6x10xf32>
    %64 = arith.maximumf %62, %63 : vector<6x10xf32>
    %65 = vector.extract_strided_slice %40 {offsets = [0, 140], sizes = [6, 10], strides = [1, 1]} : vector<6x240xf32> to vector<6x10xf32>
    %66 = vector.extract_strided_slice %40 {offsets = [0, 150], sizes = [6, 10], strides = [1, 1]} : vector<6x240xf32> to vector<6x10xf32>
    %67 = arith.maximumf %65, %66 : vector<6x10xf32>
    %68 = vector.extract_strided_slice %40 {offsets = [0, 160], sizes = [6, 10], strides = [1, 1]} : vector<6x240xf32> to vector<6x10xf32>
    %69 = vector.extract_strided_slice %40 {offsets = [0, 170], sizes = [6, 10], strides = [1, 1]} : vector<6x240xf32> to vector<6x10xf32>
    %70 = arith.maximumf %68, %69 : vector<6x10xf32>
    %71 = vector.extract_strided_slice %40 {offsets = [0, 180], sizes = [6, 10], strides = [1, 1]} : vector<6x240xf32> to vector<6x10xf32>
    %72 = vector.extract_strided_slice %40 {offsets = [0, 190], sizes = [6, 10], strides = [1, 1]} : vector<6x240xf32> to vector<6x10xf32>
    %73 = arith.maximumf %71, %72 : vector<6x10xf32>
    %74 = vector.extract_strided_slice %40 {offsets = [0, 200], sizes = [6, 10], strides = [1, 1]} : vector<6x240xf32> to vector<6x10xf32>
    %75 = vector.extract_strided_slice %40 {offsets = [0, 210], sizes = [6, 10], strides = [1, 1]} : vector<6x240xf32> to vector<6x10xf32>
    %76 = arith.maximumf %74, %75 : vector<6x10xf32>
    %77 = vector.extract_strided_slice %40 {offsets = [0, 220], sizes = [6, 10], strides = [1, 1]} : vector<6x240xf32> to vector<6x10xf32>
    %78 = vector.extract_strided_slice %40 {offsets = [0, 230], sizes = [6, 10], strides = [1, 1]} : vector<6x240xf32> to vector<6x10xf32>
    %79 = arith.maximumf %77, %78 : vector<6x10xf32>
    %80 = tpu.concatenate %46, %49, %52, %55, %58, %61, %64, %67, %70, %73, %76, %79 in 1 : vector<6x10xf32>, vector<6x10xf32>, vector<6x10xf32>, vector<6x10xf32>, vector<6x10xf32>, vector<6x10xf32>, vector<6x10xf32>, vector<6x10xf32>, vector<6x10xf32>, vector<6x10xf32>, vector<6x10xf32>, vector<6x10xf32> -> vector<6x120xf32>
    %cst_16 = arith.constant 0.000000e+00 : f32
    %81 = vector.broadcast %cst_16 : f32 to vector<6x120xf32>
    %82 = arith.maximumf %80, %81 : vector<6x120xf32>
    %83 = vector.extract_strided_slice %43 {offsets = [0, 0], sizes = [6, 10], strides = [1, 1]} : vector<6x240xf32> to vector<6x10xf32>
    %84 = vector.extract_strided_slice %43 {offsets = [0, 10], sizes = [6, 10], strides = [1, 1]} : vector<6x240xf32> to vector<6x10xf32>
    %85 = arith.maximumf %83, %84 : vector<6x10xf32>
    %86 = vector.extract_strided_slice %43 {offsets = [0, 20], sizes = [6, 10], strides = [1, 1]} : vector<6x240xf32> to vector<6x10xf32>
    %87 = vector.extract_strided_slice %43 {offsets = [0, 30], sizes = [6, 10], strides = [1, 1]} : vector<6x240xf32> to vector<6x10xf32>
    %88 = arith.maximumf %86, %87 : vector<6x10xf32>
    %89 = vector.extract_strided_slice %43 {offsets = [0, 40], sizes = [6, 10], strides = [1, 1]} : vector<6x240xf32> to vector<6x10xf32>
    %90 = vector.extract_strided_slice %43 {offsets = [0, 50], sizes = [6, 10], strides = [1, 1]} : vector<6x240xf32> to vector<6x10xf32>
    %91 = arith.maximumf %89, %90 : vector<6x10xf32>
    %92 = vector.extract_strided_slice %43 {offsets = [0, 60], sizes = [6, 10], strides = [1, 1]} : vector<6x240xf32> to vector<6x10xf32>
    %93 = vector.extract_strided_slice %43 {offsets = [0, 70], sizes = [6, 10], strides = [1, 1]} : vector<6x240xf32> to vector<6x10xf32>
    %94 = arith.maximumf %92, %93 : vector<6x10xf32>
    %95 = vector.extract_strided_slice %43 {offsets = [0, 80], sizes = [6, 10], strides = [1, 1]} : vector<6x240xf32> to vector<6x10xf32>
    %96 = vector.extract_strided_slice %43 {offsets = [0, 90], sizes = [6, 10], strides = [1, 1]} : vector<6x240xf32> to vector<6x10xf32>
    %97 = arith.maximumf %95, %96 : vector<6x10xf32>
    %98 = vector.extract_strided_slice %43 {offsets = [0, 100], sizes = [6, 10], strides = [1, 1]} : vector<6x240xf32> to vector<6x10xf32>
    %99 = vector.extract_strided_slice %43 {offsets = [0, 110], sizes = [6, 10], strides = [1, 1]} : vector<6x240xf32> to vector<6x10xf32>
    %100 = arith.maximumf %98, %99 : vector<6x10xf32>
    %101 = vector.extract_strided_slice %43 {offsets = [0, 120], sizes = [6, 10], strides = [1, 1]} : vector<6x240xf32> to vector<6x10xf32>
    %102 = vector.extract_strided_slice %43 {offsets = [0, 130], sizes = [6, 10], strides = [1, 1]} : vector<6x240xf32> to vector<6x10xf32>
    %103 = arith.maximumf %101, %102 : vector<6x10xf32>
    %104 = vector.extract_strided_slice %43 {offsets = [0, 140], sizes = [6, 10], strides = [1, 1]} : vector<6x240xf32> to vector<6x10xf32>
    %105 = vector.extract_strided_slice %43 {offsets = [0, 150], sizes = [6, 10], strides = [1, 1]} : vector<6x240xf32> to vector<6x10xf32>
    %106 = arith.maximumf %104, %105 : vector<6x10xf32>
    %107 = vector.extract_strided_slice %43 {offsets = [0, 160], sizes = [6, 10], strides = [1, 1]} : vector<6x240xf32> to vector<6x10xf32>
    %108 = vector.extract_strided_slice %43 {offsets = [0, 170], sizes = [6, 10], strides = [1, 1]} : vector<6x240xf32> to vector<6x10xf32>
    %109 = arith.maximumf %107, %108 : vector<6x10xf32>
    %110 = vector.extract_strided_slice %43 {offsets = [0, 180], sizes = [6, 10], strides = [1, 1]} : vector<6x240xf32> to vector<6x10xf32>
    %111 = vector.extract_strided_slice %43 {offsets = [0, 190], sizes = [6, 10], strides = [1, 1]} : vector<6x240xf32> to vector<6x10xf32>
    %112 = arith.maximumf %110, %111 : vector<6x10xf32>
    %113 = vector.extract_strided_slice %43 {offsets = [0, 200], sizes = [6, 10], strides = [1, 1]} : vector<6x240xf32> to vector<6x10xf32>
    %114 = vector.extract_strided_slice %43 {offsets = [0, 210], sizes = [6, 10], strides = [1, 1]} : vector<6x240xf32> to vector<6x10xf32>
    %115 = arith.maximumf %113, %114 : vector<6x10xf32>
    %116 = vector.extract_strided_slice %43 {offsets = [0, 220], sizes = [6, 10], strides = [1, 1]} : vector<6x240xf32> to vector<6x10xf32>
    %117 = vector.extract_strided_slice %43 {offsets = [0, 230], sizes = [6, 10], strides = [1, 1]} : vector<6x240xf32> to vector<6x10xf32>
    %118 = arith.maximumf %116, %117 : vector<6x10xf32>
    %119 = tpu.concatenate %85, %88, %91, %94, %97, %100, %103, %106, %109, %112, %115, %118 in 1 : vector<6x10xf32>, vector<6x10xf32>, vector<6x10xf32>, vector<6x10xf32>, vector<6x10xf32>, vector<6x10xf32>, vector<6x10xf32>, vector<6x10xf32>, vector<6x10xf32>, vector<6x10xf32>, vector<6x10xf32>, vector<6x10xf32> -> vector<6x120xf32>
    %cst_17 = arith.constant 0.000000e+00 : f32
    %120 = vector.broadcast %cst_17 : f32 to vector<6x120xf32>
    %121 = arith.maximumf %119, %120 : vector<6x120xf32>
    %122 = vector.extract_strided_slice %82 {offsets = [0, 0], sizes = [4, 120], strides = [1, 1]} : vector<6x120xf32> to vector<4x120xf32>
    %123 = vector.extract_strided_slice %121 {offsets = [0, 0], sizes = [4, 120], strides = [1, 1]} : vector<6x120xf32> to vector<4x120xf32>
    %124 = vector.extract_strided_slice %82 {offsets = [1, 0], sizes = [4, 120], strides = [1, 1]} : vector<6x120xf32> to vector<4x120xf32>
    %125 = vector.extract_strided_slice %121 {offsets = [1, 0], sizes = [4, 120], strides = [1, 1]} : vector<6x120xf32> to vector<4x120xf32>
    %126 = vector.extract_strided_slice %82 {offsets = [2, 0], sizes = [4, 120], strides = [1, 1]} : vector<6x120xf32> to vector<4x120xf32>
    %127 = tpu.concatenate %122, %123, %124, %125, %126 in 1 : vector<4x120xf32>, vector<4x120xf32>, vector<4x120xf32>, vector<4x120xf32>, vector<4x120xf32> -> vector<4x600xf32>
    %128 = vector.extract_strided_slice %121 {offsets = [0, 0], sizes = [4, 120], strides = [1, 1]} : vector<6x120xf32> to vector<4x120xf32>
    %129 = vector.extract_strided_slice %82 {offsets = [1, 0], sizes = [4, 120], strides = [1, 1]} : vector<6x120xf32> to vector<4x120xf32>
    %130 = vector.extract_strided_slice %121 {offsets = [1, 0], sizes = [4, 120], strides = [1, 1]} : vector<6x120xf32> to vector<4x120xf32>
    %131 = vector.extract_strided_slice %82 {offsets = [2, 0], sizes = [4, 120], strides = [1, 1]} : vector<6x120xf32> to vector<4x120xf32>
    %132 = vector.extract_strided_slice %121 {offsets = [2, 0], sizes = [4, 120], strides = [1, 1]} : vector<6x120xf32> to vector<4x120xf32>
    %133 = tpu.concatenate %128, %129, %130, %131, %132 in 1 : vector<4x120xf32>, vector<4x120xf32>, vector<4x120xf32>, vector<4x120xf32>, vector<4x120xf32> -> vector<4x600xf32>
    %134 = tpu.concatenate %127, %133 in 0 : vector<4x600xf32>, vector<4x600xf32> -> vector<8x600xf32>
    %c0_18 = arith.constant 0 : index
    %c0_19 = arith.constant 0 : index
    %135 = vector.load %arg4[%c0_18, %c0_19] : memref<600x160xf32, #tpu.memory_space<vmem>>, vector<600x160xf32>
    %cst_20 = arith.constant dense<0.000000e+00> : vector<8x160xf32>
    %136 = tpu.matmul %134, %135, %cst_20 {dimension_numbers = #tpu.dot_dimension_numbers<[1], [0], [0], [1], [0, 0, 1, 1], [], []>} : vector<8x600xf32>, vector<600x160xf32>, vector<8x160xf32> -> vector<8x160xf32>
    %c0_21 = arith.constant 0 : index
    %c0_22 = arith.constant 0 : index
    %137 = vector.load %arg5[%c0_21, %c0_22] : memref<1x160xf32, #tpu.memory_space<vmem>>, vector<1x160xf32>
    %138 = vector.broadcast %137 : vector<1x160xf32> to vector<8x160xf32>
    %139 = arith.addf %136, %138 : vector<8x160xf32>
    %140 = vector.extract_strided_slice %139 {offsets = [0, 0], sizes = [4, 160], strides = [1, 1]} : vector<8x160xf32> to vector<4x160xf32>
    %141 = vector.extract_strided_slice %139 {offsets = [4, 0], sizes = [4, 160], strides = [1, 1]} : vector<8x160xf32> to vector<4x160xf32>
    %142 = arith.maximumf %140, %141 : vector<4x160xf32>
    %143 = vector.extract_strided_slice %142 {offsets = [0, 0], sizes = [4, 20], strides = [1, 1]} : vector<4x160xf32> to vector<4x20xf32>
    %144 = vector.extract_strided_slice %142 {offsets = [0, 20], sizes = [4, 20], strides = [1, 1]} : vector<4x160xf32> to vector<4x20xf32>
    %145 = arith.maximumf %143, %144 : vector<4x20xf32>
    %146 = vector.extract_strided_slice %142 {offsets = [0, 40], sizes = [4, 20], strides = [1, 1]} : vector<4x160xf32> to vector<4x20xf32>
    %147 = vector.extract_strided_slice %142 {offsets = [0, 60], sizes = [4, 20], strides = [1, 1]} : vector<4x160xf32> to vector<4x20xf32>
    %148 = arith.maximumf %146, %147 : vector<4x20xf32>
    %149 = vector.extract_strided_slice %142 {offsets = [0, 80], sizes = [4, 20], strides = [1, 1]} : vector<4x160xf32> to vector<4x20xf32>
    %150 = vector.extract_strided_slice %142 {offsets = [0, 100], sizes = [4, 20], strides = [1, 1]} : vector<4x160xf32> to vector<4x20xf32>
    %151 = arith.maximumf %149, %150 : vector<4x20xf32>
    %152 = vector.extract_strided_slice %142 {offsets = [0, 120], sizes = [4, 20], strides = [1, 1]} : vector<4x160xf32> to vector<4x20xf32>
    %153 = vector.extract_strided_slice %142 {offsets = [0, 140], sizes = [4, 20], strides = [1, 1]} : vector<4x160xf32> to vector<4x20xf32>
    %154 = arith.maximumf %152, %153 : vector<4x20xf32>
    %155 = tpu.concatenate %145, %148, %151, %154 in 1 : vector<4x20xf32>, vector<4x20xf32>, vector<4x20xf32>, vector<4x20xf32> -> vector<4x80xf32>
    %cst_23 = arith.constant 0.000000e+00 : f32
    %156 = vector.broadcast %cst_23 : f32 to vector<4x80xf32>
    %157 = arith.maximumf %155, %156 : vector<4x80xf32>
    %158 = vector.extract_strided_slice %157 {offsets = [0, 0], sizes = [1, 80], strides = [1, 1]} : vector<4x80xf32> to vector<1x80xf32>
    %159 = vector.extract_strided_slice %157 {offsets = [1, 0], sizes = [1, 80], strides = [1, 1]} : vector<4x80xf32> to vector<1x80xf32>
    %160 = vector.extract_strided_slice %157 {offsets = [2, 0], sizes = [1, 80], strides = [1, 1]} : vector<4x80xf32> to vector<1x80xf32>
    %161 = vector.extract_strided_slice %157 {offsets = [3, 0], sizes = [1, 80], strides = [1, 1]} : vector<4x80xf32> to vector<1x80xf32>
    %162 = tpu.concatenate %158, %159, %160, %161 in 1 : vector<1x80xf32>, vector<1x80xf32>, vector<1x80xf32>, vector<1x80xf32> -> vector<1x320xf32>
    %c0_24 = arith.constant 0 : index
    %c0_25 = arith.constant 0 : index
    %163 = vector.load %arg6[%c0_24, %c0_25] : memref<320x50xf32, #tpu.memory_space<vmem>>, vector<320x50xf32>
    %cst_26 = arith.constant dense<0.000000e+00> : vector<1x50xf32>
    %164 = tpu.matmul %162, %163, %cst_26 {dimension_numbers = #tpu.dot_dimension_numbers<[1], [0], [0], [1], [0, 0, 1, 1], [], []>} : vector<1x320xf32>, vector<320x50xf32>, vector<1x50xf32> -> vector<1x50xf32>
    %c0_27 = arith.constant 0 : index
    %c0_28 = arith.constant 0 : index
    %165 = vector.load %arg7[%c0_27, %c0_28] : memref<1x50xf32, #tpu.memory_space<vmem>>, vector<1x50xf32>
    %166 = arith.addf %164, %165 : vector<1x50xf32>
    %cst_29 = arith.constant 0.000000e+00 : f32
    %167 = vector.broadcast %cst_29 : f32 to vector<1x50xf32>
    %168 = arith.maximumf %166, %167 : vector<1x50xf32>
    %c0_30 = arith.constant 0 : index
    %c0_31 = arith.constant 0 : index
    %169 = vector.load %arg8[%c0_30, %c0_31] : memref<50x10xf32, #tpu.memory_space<vmem>>, vector<50x10xf32>
    %cst_32 = arith.constant dense<0.000000e+00> : vector<1x10xf32>
    %170 = tpu.matmul %168, %169, %cst_32 {dimension_numbers = #tpu.dot_dimension_numbers<[1], [0], [0], [1], [0, 0, 1, 1], [], []>} : vector<1x50xf32>, vector<50x10xf32>, vector<1x10xf32> -> vector<1x10xf32>
    %c0_33 = arith.constant 0 : index
    %c0_34 = arith.constant 0 : index
    %171 = vector.load %arg9[%c0_33, %c0_34] : memref<1x10xf32, #tpu.memory_space<vmem>>, vector<1x10xf32>
    %172 = arith.addf %170, %171 : vector<1x10xf32>
    %cst_35 = arith.constant dense<0xFF800000> : vector<1xf32>
    %173 = vector.multi_reduction <maximumf>, %172, %cst_35 [1] : vector<1x10xf32> to vector<1xf32>
    %174 = vector.shape_cast %173 : vector<1xf32> to vector<1x1xf32>
    %175 = vector.broadcast %174 : vector<1x1xf32> to vector<1x10xf32>
    %176 = arith.subf %172, %175 : vector<1x10xf32>
    %177 = math.exp %176 : vector<1x10xf32>
    %cst_36 = arith.constant dense<0.000000e+00> : vector<1xf32>
    %178 = vector.multi_reduction <add>, %177, %cst_36 [1] : vector<1x10xf32> to vector<1xf32>
    %179 = vector.shape_cast %178 : vector<1xf32> to vector<1x1xf32>
    %180 = math.log %179 : vector<1x1xf32>
    %181 = vector.broadcast %180 : vector<1x1xf32> to vector<1x10xf32>
    %182 = arith.subf %176, %181 : vector<1x10xf32>
    %c0_37 = arith.constant 0 : index
    %c0_38 = arith.constant 0 : index
    %c0_39 = arith.constant 0 : index
    %183 = vector.load %arg10[%c0_37, %c0_38, %c0_39] : memref<1x1x10xf32, #tpu.memory_space<vmem>>, vector<1x1x10xf32>
    %184 = vector.shape_cast %183 : vector<1x1x10xf32> to vector<1x10xf32>
    %185 = vector.shape_cast %182 : vector<1x10xf32> to vector<1x1x10xf32>
    tpu.vector_store %arg10[%c0_37, %c0_38, %c0_39], %185 {strides = array<i32>} : memref<1x1x10xf32, #tpu.memory_space<vmem>>, vector<1x1x10xf32>,
    return
  }
  func.func @transform_0(%arg0: i32) -> (i32, i32, i32, i32) {
    %c0_i32 = arith.constant 0 : i32
    %c0_i32_0 = arith.constant 0 : i32
    %c0_i32_1 = arith.constant 0 : i32
    %c0_i32_2 = arith.constant 0 : i32
    return %arg0, %c0_i32, %c0_i32_0, %c0_i32_1 : i32, i32, i32, i32
  }
  func.func @transform_1(%arg0: i32) -> (i32, i32) {
    %c0_i32 = arith.constant 0 : i32
    %c0_i32_0 = arith.constant 0 : i32
    %c0_i32_1 = arith.constant 0 : i32
    return %c0_i32, %c0_i32_0 : i32, i32
  }
  func.func @transform_2(%arg0: i32) -> (i32, i32) {
    %c0_i32 = arith.constant 0 : i32
    %c0_i32_0 = arith.constant 0 : i32
    %c0_i32_1 = arith.constant 0 : i32
    return %c0_i32, %c0_i32_0 : i32, i32
  }
  func.func @transform_3(%arg0: i32) -> (i32, i32) {
    %c0_i32 = arith.constant 0 : i32
    %c0_i32_0 = arith.constant 0 : i32
    %c0_i32_1 = arith.constant 0 : i32
    return %c0_i32, %c0_i32_0 : i32, i32
  }
  func.func @transform_4(%arg0: i32) -> (i32, i32) {
    %c0_i32 = arith.constant 0 : i32
    %c0_i32_0 = arith.constant 0 : i32
    %c0_i32_1 = arith.constant 0 : i32
    return %c0_i32, %c0_i32_0 : i32, i32
  }
  func.func @transform_5(%arg0: i32) -> (i32, i32) {
    %c0_i32 = arith.constant 0 : i32
    %c0_i32_0 = arith.constant 0 : i32
    %c0_i32_1 = arith.constant 0 : i32
    return %c0_i32, %c0_i32_0 : i32, i32
  }
  func.func @transform_6(%arg0: i32) -> (i32, i32) {
    %c0_i32 = arith.constant 0 : i32
    %c0_i32_0 = arith.constant 0 : i32
    %c0_i32_1 = arith.constant 0 : i32
    return %c0_i32, %c0_i32_0 : i32, i32
  }
  func.func @transform_7(%arg0: i32) -> (i32, i32) {
    %c0_i32 = arith.constant 0 : i32
    %c0_i32_0 = arith.constant 0 : i32
    %c0_i32_1 = arith.constant 0 : i32
    return %c0_i32, %c0_i32_0 : i32, i32
  }
  func.func @transform_8(%arg0: i32) -> (i32, i32) {
    %c0_i32 = arith.constant 0 : i32
    %c0_i32_0 = arith.constant 0 : i32
    %c0_i32_1 = arith.constant 0 : i32
    return %c0_i32, %c0_i32_0 : i32, i32
  }
  func.func @transform_9(%arg0: i32) -> (i32, i32, i32) {
    %c0_i32 = arith.constant 0 : i32
    %c0_i32_0 = arith.constant 0 : i32
    %c0_i32_1 = arith.constant 0 : i32
    return %arg0, %c0_i32, %c0_i32_0 : i32, i32, i32
  }
}

</mosaic_0001>

<bundles_post_ra>
// kernel: tile.13
= control target key start
LH: loop header
LB: loop body
LE: loop exit
PB: predicated region body
PF: predicated region fallthrough
CT: control target
= control target key end

     0   :  { %s34_s0 = inlined_call_operand.vmem [shape: f32[10], index: 0, kind: input, shape index: {}]   ;;  %s35_s1 = inlined_call_operand.vmem [shape: f32[24,10], index: 1, kind: output, shape index: {}]  }
   0x1   :  { %v4_v0 = vld [vmem:[%s34_s0] ss:$0 sm:$0xff] }
   0x2   :  { %5 = vst [vmem:[%s35_s1] sm:$0xff] %v4_v0  ;;  %10 = vst [vmem:[%s35_s1 + $0x8] sm:$0xff] %v4_v0 }
   0x3   :  { %11 = vst [vmem:[%s35_s1 + $0x10] sm:$0xff] %v4_v0 }

// kernel: tile.14
= control target key start
LH: loop header
LB: loop body
LE: loop exit
PB: predicated region body
PF: predicated region fallthrough
CT: control target
= control target key end

     0   :  { %vm9_vm0 = vcmask 64512   ;;  %s223_s12 = smov 120   ;;  %s224_s13 = smov 102   ;;  %vm3_vm1 = vcmask 80896   ;;  %vm13_vm2 = vcmask 15360   ;;  %vm16_vm3 = vcmask 1048512   ;;  %s337_s0 = inlined_call_operand.vmem [shape: f32[24,10], index: 0, kind: input, shape index: {}]   ;;  %s338_s1 = inlined_call_operand.vmem [shape: f32[1,240], index: 1, kind: output, shape index: {}]  }
   0x1   :  { %v175_v0 = vld [vmem:[%s337_s0 + $0xc] sm:$0x1]   ;;  %v178_v3 = vld [vmem:[%s337_s0 + $0x17] sm:$0x1]   ;;  %v177_v4 = vld [vmem:[%s337_s0 + $0xb] sm:$0x1]  }
   0x2   :  { %v176_v1 = vld [vmem:[%s337_s0 + $0xc] sm:$0x1]   ;;  %26 = vrot.lane.b32.xlu1 %v178_v3, %s224_s13  ;;  %v179_v5 = vld [vmem:[%s337_s0 + $0xa] sm:$0x1]   ;;  %s225_s18 = smov 110   ;;  %s226_s19 = smov 100  }
   0x3   :  { %v10_v2 = vsel %vm9_vm0, %v176_v1, %v175_v0  ;;  %v180_v6 = vld [vmem:[%s337_s0 + $0x16] sm:$0x1]   ;;  %v181_v7 = vld [vmem:[%s337_s0 + $0x9] sm:$0x1]   ;;  %s227_s24 = smov 92   ;;  %s228_s25 = smov 90  }
   0x4   :  { %11 = vrot.lane.b32.xlu0 %v10_v2, %s223_s12  ;;  %v182_v8 = vld [vmem:[%s337_s0 + $0x15] sm:$0x1]   ;;  %v183_v9 = vld [vmem:[%s337_s0 + $0x8] sm:$0x1]   ;;  %v2_v10 = vld [vmem:[%s337_s0] sm:$0x1]  }
   0x5   :  { %4 = vst.msk [vmem:[#allocation0] sm:$0x1] %vm3_vm1, %v2_v10   ;;  %s229_s3 = smov 82   ;;  %s230_s4 = smov 80   ;;  %v184_v11 = vld [vmem:[%s337_s0 + $0x14] sm:$0x1]  }
   0x6   :  { %33 = vrot.lane.b32.xlu1 %v179_v5, %s226_s19  ;;  %v185_v12 = vld [vmem:[%s337_s0 + $0x7] sm:$0x1]   ;;  %s231_s9 = smov 72   ;;  %s232_s10 = smov 70   ;;  %v186_v13 = vld [vmem:[%s337_s0 + $0x13] sm:$0x1]  }
   0x7   :  { %v187_v14 = vld [vmem:[%s337_s0 + $0x6] sm:$0x1]   ;;  %s233_s15 = smov 62   ;;  %s234_s16 = smov 60   ;;  %v188_v15 = vld [vmem:[%s337_s0 + $0x12] sm:$0x1]  }
   0x8   :  { %20 = vrot.lane.b32.xlu0 %v177_v4, %s225_s18  ;;  %v189_v16 = vld [vmem:[%s337_s0 + $0x5] sm:$0x1]   ;;  %s235_s21 = smov 52   ;;  %s236_s22 = smov 50   ;;  %v190_v17 = vld [vmem:[%s337_s0 + $0x11] sm:$0x1]  }
   0x9   :  { %v191_v18 = vld [vmem:[%s337_s0 + $0x4] sm:$0x1]   ;;  %s237_s27 = smov 42   ;;  %s238_s28 = smov 40   ;;  %v192_v19 = vld [vmem:[%s337_s0 + $0x10] sm:$0x1]  }
   0xa   :  { %46 = vrot.lane.b32.xlu1 %v181_v7, %s228_s25  ;;  %v193_v20 = vld [vmem:[%s337_s0 + $0x3] sm:$0x1]   ;;  %s240_s5 = smov 30   ;;  %v194_v21 = vld [vmem:[%s337_s0 + $0xf] sm:$0x1]   ;;  %s242_s11 = smov 20  }
   0xb   :  { %v195_v22 = vld [vmem:[%s337_s0 + $0x2] sm:$0x1]   ;;  %v196_v23 = vld [vmem:[%s337_s0 + $0xe] sm:$0x1]   ;;  %v197_v24 = vld [vmem:[%s337_s0 + $0x1] sm:$0x1]  }
   0xc   :  { %39 = vrot.lane.b32.xlu0 %v180_v6, %s227_s24  ;;  %s244_s17 = smov 10   ;;  %v198_v25 = vld [vmem:[%s337_s0 + $0xd] sm:$0x1]   ;;  %s245_s0 = smov 2   ;;  %vm28_vm4 = vcmask 917296   ;;  %vm22_vm5 = vcmask 982896  }
   0xd   :  { %vm35_vm6 = vcmask 900896   ;;  %vm41_vm7 = vcmask 835296   ;;  %vm48_vm8 = vcmask 818896   ;;  %vm54_vm9 = vcmask 753296  }
   0xe   :  { %59 = vrot.lane.b32.xlu1 %v183_v9, %s230_s4  ;;  %s239_s4 = smov 32   ;;  %vm61_vm10 = vcmask 736896   ;;  %vm67_vm11 = vcmask 671296   ;;  %vm74_vm12 = vcmask 654896   ;;  %vm80_vm13 = vcmask 589296  }
   0xf   :  { %vm87_vm14 = vcmask 572896   ;;  %vm93_vm15 = vcmask 507296   ;;  %vm100_vm0 = vcmask 490896   ;;  %vm106_vm1 = vcmask 425296  }
  0x10   :  { %52 = vrot.lane.b32.xlu0 %v182_v8, %s229_s3 }
  0x12   :  { %72 = vrot.lane.b32.xlu1 %v185_v12, %s232_s10  ;;  %s241_s10 = smov 22  }
  0x14   :  { %65 = vrot.lane.b32.xlu0 %v184_v11, %s231_s9 }
  0x16   :  { %85 = vrot.lane.b32.xlu1 %v187_v14, %s234_s16  ;;  %s243_s16 = smov 12  }
  0x18   :  { %78 = vrot.lane.b32.xlu0 %v186_v13, %s233_s15 }
  0x1a   :  { %98 = vrot.lane.b32.xlu1 %v189_v16, %s236_s22 }
  0x1c   :  { %91 = vrot.lane.b32.xlu0 %v188_v15, %s235_s21 }
  0x1e   :  { %111 = vrot.lane.b32.xlu1 %v191_v18, %s238_s28 }
  0x20   :  { %104 = vrot.lane.b32.xlu0 %v190_v17, %s237_s27 }
  0x22   :  { %124 = vrot.lane.b32.xlu1 %v193_v20, %s240_s5 }
  0x24   :  { %117 = vrot.lane.b32.xlu0 %v192_v19, %s239_s4 }
  0x26   :  { %137 = vrot.lane.b32.xlu1 %v195_v22, %s242_s11 }
  0x28   :  { %130 = vrot.lane.b32.xlu0 %v194_v21, %s241_s10 }
  0x2a   :  { %150 = vrot.lane.b32.xlu1 %v197_v24, %s244_s17 }
  0x2c   :  { %143 = vrot.lane.b32.xlu0 %v196_v23, %s243_s16 }
  0x30   :  { %156 = vrot.lane.b32.xlu0 %v198_v25, %s245_s0 }
  0x74   :  { %v27_v27 = vpop.permute.xlu1 %26  }
  0x76   :  { %v12_v26 = vpop.permute.xlu0 %11  }
  0x77   :  { %15 = vst.msk [vmem:[#allocation0 + $0x8] sm:$0x1] %vm13_vm2, %v12_v26   ;;  %vm113_vm2 = vcmask 408896  }
  0x78   :  { %17 = vst.msk [vmem:[#allocation0] sm:$0x1] %vm16_vm3, %v12_v26   ;;  %v34_v29 = vpop.permute.xlu1 %33   ;;  %vm119_vm3 = vcmask 343296  }
  0x79   :  { %30 = vst.msk [vmem:[#allocation0 + $0x8] sm:$0x1] %vm28_vm4, %v27_v27   ;;  %vm126_vm4 = vcmask 326896  }
  0x7a   :  { %v21_v28 = vpop.permute.xlu0 %20  }
  0x7b   :  { %23 = vst.msk [vmem:[#allocation0] sm:$0x1] %vm22_vm5, %v21_v28   ;;  %vm132_vm5 = vcmask 261296  }
  0x7c   :  { %36 = vst.msk [vmem:[#allocation0] sm:$0x1] %vm35_vm6, %v34_v29   ;;  %v47_v31 = vpop.permute.xlu1 %46   ;;  %vm139_vm6 = vcmask 244896  }
  0x7d   :  { %49 = vst.msk [vmem:[#allocation0] sm:$0x1] %vm48_vm8, %v47_v31   ;;  %vm152_vm8 = vcmask 162896  }
  0x7e   :  { %v40_v30 = vpop.permute.xlu0 %39  }
  0x7f   :  { %43 = vst.msk [vmem:[#allocation0 + $0x8] sm:$0x1] %vm41_vm7, %v40_v30   ;;  %vm145_vm7 = vcmask 179296  }
  0x80   :  { %v60_v33 = vpop.permute.xlu1 %59  }
  0x81   :  { %62 = vst.msk [vmem:[#allocation0] sm:$0x1] %vm61_vm10, %v60_v33  }
  0x82   :  { %v53_v32 = vpop.permute.xlu0 %52  }
  0x83   :  { %56 = vst.msk [vmem:[#allocation0 + $0x8] sm:$0x1] %vm54_vm9, %v53_v32   ;;  %vm158_vm9 = vcmask 97296  }
  0x84   :  { %v73_v35 = vpop.permute.xlu1 %72  }
  0x85   :  { %75 = vst.msk [vmem:[#allocation0] sm:$0x1] %vm74_vm12, %v73_v35  }
  0x86   :  { %v66_v34 = vpop.permute.xlu0 %65  }
  0x87   :  { %69 = vst.msk [vmem:[#allocation0 + $0x8] sm:$0x1] %vm67_vm11, %v66_v34  }
  0x88   :  { %v86_v37 = vpop.permute.xlu1 %85  }
  0x89   :  { %88 = vst.msk [vmem:[#allocation0] sm:$0x1] %vm87_vm14, %v86_v37  }
  0x8a   :  { %v79_v36 = vpop.permute.xlu0 %78  }
  0x8b   :  { %82 = vst.msk [vmem:[#allocation0 + $0x8] sm:$0x1] %vm80_vm13, %v79_v36  }
  0x8c   :  { %v99_v39 = vpop.permute.xlu1 %98  }
  0x8d   :  { %101 = vst.msk [vmem:[#allocation0] sm:$0x1] %vm100_vm0, %v99_v39  }
  0x8e   :  { %v92_v38 = vpop.permute.xlu0 %91  }
  0x8f   :  { %95 = vst.msk [vmem:[#allocation0 + $0x8] sm:$0x1] %vm93_vm15, %v92_v38  }
  0x90   :  { %v112_v41 = vpop.permute.xlu1 %111  }
  0x91   :  { %114 = vst.msk [vmem:[#allocation0] sm:$0x1] %vm113_vm2, %v112_v41  }
  0x92   :  { %v105_v40 = vpop.permute.xlu0 %104  }
  0x93   :  { %108 = vst.msk [vmem:[#allocation0 + $0x8] sm:$0x1] %vm106_vm1, %v105_v40  }
  0x94   :  { %v125_v43 = vpop.permute.xlu1 %124  }
  0x95   :  { %127 = vst.msk [vmem:[#allocation0] sm:$0x1] %vm126_vm4, %v125_v43  }
  0x96   :  { %v118_v42 = vpop.permute.xlu0 %117  }
  0x97   :  { %121 = vst.msk [vmem:[#allocation0 + $0x8] sm:$0x1] %vm119_vm3, %v118_v42  }
  0x98   :  { %v138_v45 = vpop.permute.xlu1 %137  }
  0x99   :  { %140 = vst.msk [vmem:[#allocation0] sm:$0x1] %vm139_vm6, %v138_v45  }
  0x9a   :  { %v131_v44 = vpop.permute.xlu0 %130  }
  0x9b   :  { %134 = vst.msk [vmem:[#allocation0 + $0x8] sm:$0x1] %vm132_vm5, %v131_v44  }
  0x9c   :  { %v151_v47 = vpop.permute.xlu1 %150  }
  0x9d   :  { %153 = vst.msk [vmem:[#allocation0] sm:$0x1] %vm152_vm8, %v151_v47  }
  0x9e   :  { %v144_v46 = vpop.permute.xlu0 %143  }
  0x9f   :  { %147 = vst.msk [vmem:[#allocation0 + $0x8] sm:$0x1] %vm145_vm7, %v144_v46  }
  0xa2   :  { %v157_v48 = vpop.permute.xlu0 %156  }
  0xa3   :  { %160 = vst.msk [vmem:[#allocation0 + $0x8] sm:$0x1] %vm158_vm9, %v157_v48  }
  0xa4   :  { %v165_v49 = vld [vmem:[#allocation0] sm:$0x1] }
  0xa5   :  { %168 = vst [vmem:[%s338_s1] sm:$0x1] %v165_v49 }
  0xaa   :  { %v170_v50 = vld [vmem:[#allocation0 + $0x8] sm:$0x1] }
  0xab   :  { %199 = vst [vmem:[%s338_s1 + $0x1] sm:$0x1] %v170_v50 }

// kernel: tile.18
= control target key start
LH: loop header
LB: loop body
LE: loop exit
PB: predicated region body
PF: predicated region fallthrough
CT: control target
= control target key end

     0   :  { %s22_s0 = inlined_call_operand.vmem [shape: f32[20], index: 0, kind: input, shape index: {}]   ;;  %s23_s1 = inlined_call_operand.vmem [shape: f32[8,20], index: 1, kind: output, shape index: {}]  }
   0x1   :  { %v4_v0 = vld [vmem:[%s22_s0] ss:$0 sm:$0xff] }
   0x2   :  { %5 = vst [vmem:[%s23_s1] sm:$0xff] %v4_v0 }

// kernel: tile.19
= control target key start
LH: loop header
LB: loop body
LE: loop exit
PB: predicated region body
PF: predicated region fallthrough
CT: control target
= control target key end

     0   :  { %vm9_vm0 = vcmask 64512   ;;  %s85_s12 = smov 120   ;;  %s86_s13 = smov 80   ;;  %vm3_vm1 = vcmask 162816   ;;  %vm13_vm2 = vcmask 97280   ;;  %vm16_vm3 = vcmask 1048512   ;;  %s135_s0 = inlined_call_operand.vmem [shape: f32[8,20], index: 0, kind: input, shape index: {}]   ;;  %s136_s1 = inlined_call_operand.vmem [shape: f32[1,160], index: 1, kind: output, shape index: {}]  }
   0x1   :  { %v69_v0 = vld [vmem:[%s135_s0 + $0x6] sm:$0x1]   ;;  %v72_v3 = vld [vmem:[%s135_s0 + $0x4] sm:$0x1]   ;;  %v71_v4 = vld [vmem:[%s135_s0 + $0x5] sm:$0x1]  }
   0x2   :  { %v70_v1 = vld [vmem:[%s135_s0 + $0x6] sm:$0x1]   ;;  %26 = vrot.lane.b32.xlu1 %v72_v3, %s86_s13  ;;  %v73_v5 = vld [vmem:[%s135_s0 + $0x3] sm:$0x1]   ;;  %v2_v6 = vld [vmem:[%s135_s0] sm:$0x1]  }
   0x3   :  { %v10_v2 = vsel %vm9_vm0, %v70_v1, %v69_v0  ;;  %4 = vst.msk [vmem:[#allocation0] sm:$0x1] %vm3_vm1, %v2_v6   ;;  %s87_s20 = smov 100   ;;  %s88_s21 = smov 60   ;;  %v74_v7 = vld [vmem:[%s135_s0 + $0x2] sm:$0x1]  }
   0x4   :  { %11 = vrot.lane.b32.xlu0 %v10_v2, %s85_s12  ;;  %v75_v8 = vld [vmem:[%s135_s0 + $0x1] sm:$0x1]   ;;  %s89_s26 = smov 40   ;;  %s90_s27 = smov 20   ;;  %v76_v9 = vld [vmem:[%s135_s0 + $0x7] sm:$0x1]  }
   0x5   :  { %s91_s0 = smov 12   ;;  %vm22_vm4 = vcmask 982816   ;;  %vm28_vm5 = vcmask 818816   ;;  %vm34_vm6 = vcmask 654816   ;;  %vm40_vm7 = vcmask 490816  }
   0x6   :  { %32 = vrot.lane.b32.xlu1 %v73_v5, %s88_s21  ;;  %vm46_vm8 = vcmask 326816   ;;  %vm52_vm9 = vcmask 261216  }
   0x8   :  { %20 = vrot.lane.b32.xlu0 %v71_v4, %s87_s20 }
   0xa   :  { %44 = vrot.lane.b32.xlu1 %v75_v8, %s90_s27 }
   0xc   :  { %38 = vrot.lane.b32.xlu0 %v74_v7, %s89_s26 }
  0x10   :  { %50 = vrot.lane.b32.xlu0 %v76_v9, %s91_s0 }
  0x74   :  { %v27_v11 = vpop.permute.xlu1 %26  }
  0x76   :  { %v12_v10 = vpop.permute.xlu0 %11  }
  0x77   :  { %15 = vst.msk [vmem:[#allocation0 + $0x8] sm:$0x1] %vm13_vm2, %v12_v10  }
  0x78   :  { %17 = vst.msk [vmem:[#allocation0] sm:$0x1] %vm16_vm3, %v12_v10   ;;  %v33_v13 = vpop.permute.xlu1 %32  }
  0x7a   :  { %v21_v12 = vpop.permute.xlu0 %20  }
  0x7b   :  { %23 = vst.msk [vmem:[#allocation0] sm:$0x1] %vm22_vm4, %v21_v12  }
  0x7c   :  { %29 = vst.msk [vmem:[#allocation0] sm:$0x1] %vm28_vm5, %v27_v11   ;;  %v45_v15 = vpop.permute.xlu1 %44  }
  0x7d   :  { %35 = vst.msk [vmem:[#allocation0] sm:$0x1] %vm34_vm6, %v33_v13  }
  0x7e   :  { %v39_v14 = vpop.permute.xlu0 %38  }
  0x7f   :  { %41 = vst.msk [vmem:[#allocation0] sm:$0x1] %vm40_vm7, %v39_v14  }
  0x80   :  { %47 = vst.msk [vmem:[#allocation0] sm:$0x1] %vm46_vm8, %v45_v15  }
  0x82   :  { %v51_v16 = vpop.permute.xlu0 %50  }
  0x83   :  { %54 = vst.msk [vmem:[#allocation0 + $0x8] sm:$0x1] %vm52_vm9, %v51_v16  }
  0x87   :  { %v59_v17 = vld [vmem:[#allocation0] sm:$0x1] }
  0x88   :  { %62 = vst [vmem:[%s136_s1] sm:$0x1] %v59_v17 }
  0x8a   :  { %v64_v18 = vld [vmem:[#allocation0 + $0x8] sm:$0x1] }
  0x8b   :  { %77 = vst [vmem:[%s136_s1 + $0x1] sm:$0x1] %v64_v18 }

// kernel: net_forward.1
= control target key start
LH: loop header
LB: loop body
LE: loop exit
PB: predicated region body
PF: predicated region fallthrough
CT: control target
= control target key end

     0   :  { %14 = vsyncpa [#allocation3], 0  ;;  %s3034_s0 = inlined_call_operand.vmem [shape: f32[2,4,7,28], index: 0, kind: input, shape index: {}]   ;;  %s3035_s1 = inlined_call_operand.vmem [shape: f32[140,240], index: 1, kind: input, shape index: {}]   ;;  %s3036_s2 = inlined_call_operand.vmem [shape: f32[1,240], index: 2, kind: input, shape index: {}]   ;;  %s3037_s3 = inlined_call_operand.vmem [shape: f32[600,160], index: 3, kind: input, shape index: {}]   ;;  %s3038_s4 = inlined_call_operand.vmem [shape: f32[1,160], index: 4, kind: input, shape index: {}]   ;;  %s3039_s5 = inlined_call_operand.vmem [shape: f32[320,50], index: 5, kind: input, shape index: {}]   ;;  %s3040_s6 = inlined_call_operand.vmem [shape: f32[1,50], index: 6, kind: input, shape index: {}]   ;;  %s3041_s7 = inlined_call_operand.vmem [shape: f32[50,10], index: 7, kind: input, shape index: {}]   ;;  %s3042_s8 = inlined_call_operand.vmem [shape: f32[1,10], index: 8, kind: input, shape index: {}]   ;;  %s3043_s9 = inlined_call_operand.hbm [shape: f32[2,1,10], index: 9, kind: output, shape index: {}]  }
   0x1   :  { %16 = vsyncpa [#allocation3 + $0x1], 0  ;;  %s1993_s30 = smov 0   ;;  %s1995_s10 = smov 0  }
   0x2   :  { %s1997_s11 = smov 0   ;;  %s1999_s12 = smov 0  }
   0x3 LB: > { %s2014_s13 = sadd.s32 4294967295, %s1919_s12   ;;  %s1650_s14 = sadd.s32 4294967294, %s1919_s12   ;;  %s1919_s12 = sphi %s1999_s12, %s3054_s12   ;;  %s1915_s11 = sphi %s1997_s11, %s3053_s11   ;;  %s1911_s10 = sphi %s1995_s10, %s3052_s10   ;;  %s1907_s30 = sphi %s1993_s30, %s3051_s30  }
   0x4   : > { %s2018_s15 = sadd.s32 1, %s1919_s12   ;;  %s223_s16 = sadd.s32 1, %s1915_s11 }
   0x5   : > { %s220_s17 = ssub.s32 %s1919_s12, %s2018_s15  ;;  %p233_p0 = scmp.ne.s32.totalorder %s1915_s11, %s1911_s10 }
   0x6   : > { %p221_p1 = scmp.eq.s32.totalorder %s220_s17, 0  ;;  %p234_p2 = scmp.eq.s32.totalorder %s2014_s13, 1 }
   0x7   : > { %p239_p3 = scmp.ne.s32.totalorder %s1911_s10, %s1907_s30  ;;  %p240_p4 = scmp.eq.s32.totalorder %s1650_s14, 1 }
   0x8   : > { %s2029_s18 = scalar_select %p221_p1, %s1915_s11, %s223_s16  }
   0x9   : > { %p2031_p5 = por %p234_p2, %p233_p0  ;;  %p2035_p6 = por %p240_p4, %p239_p3 }
   0xa   : > { %3046 = sst [smem:[#allocation5_spill]] %s2029_s18  ;;  %p1653_p7 = scmp.ge.s32.totalorder %s1919_s12, 1 }
   0xb   : > { %p290_p8 = scmp.lt.s32.totalorder %s1919_s12, 3 }
   0xd   : > { %p291_p9 = pnand %p1653_p7, %p290_p8 }
   0xe   : > { %p325_p10 = scmp.lt.s32.totalorder (!%p291_p9), %s2014_s13, 1  ;;  %s1924_s25 = smov (!%p291_p9), 112  }
   0xf   : > { %294 = sbr.rel (%p291_p9) target bundleno = 2099 (0x833), region = 56  ;;  %s1925_s14 = smov (!%p291_p9), 118  }
  0x10   : > { %s1927_s16 = smov (!%p291_p9), 88   ;;  %s1928_s18 = smov (!%p291_p9), 98  }
  0x11   : > { %s1929_s17 = smov (!%p291_p9), 78   ;;  %s1931_s21 = smov (!%p291_p9), 58  }
  0x12   : > { %s1932_s23 = smov (!%p291_p9), 48   ;;  %s1933_s24 = smov (!%p291_p9), 38  }
  0x13   : > { %s1934_s26 = smov (!%p291_p9), 18   ;;  %s1937_s28 = smov (!%p291_p9), 96  }
  0x14   : > { %v468_v0 = vld [vmem:[%s3035_s1 + $0xf8] sm:$0xff]  ;;  %v467_v1 = vld [vmem:[%s3035_s1 + $0xf0] sm:$0xff]  ;;  %v466_v2 = vld [vmem:[%s3035_s1 + $0xe8] sm:$0xff]  ;;  %s326_s29 = scalar_select %p325_p10, %s2014_s13, 1  ;;  %vm431_vm0 = vcmask 1043456   ;;  %vm354_vm1 = vcmask 228352  }
  0x15   : > { %501 = vmatprep.subr.mxu0 %v468_v0  ;;  %v465_v3 = vld [vmem:[%s3035_s1 + $0xe0] sm:$0xff]  ;;  %v464_v4 = vld [vmem:[%s3035_s1 + $0xd8] sm:$0xff]  ;;  %v463_v5 = vld [vmem:[%s3035_s1 + $0xd0] sm:$0xff]  ;;  %vm356_vm2 = vcmask 457728   ;;  %vm358_vm3 = vcmask 687104   ;;  %vm360_vm4 = vcmask 916480  }
  0x16   : > { %502 = vmatpush1.msra.mxu0 %v467_v1  ;;  %s1671_s22 = sshll.u32 %s326_s29, 5  ;;  %v462_v6 = vld [vmem:[%s3035_s1 + $0xc8] sm:$0xff]  ;;  %v461_v7 = vld [vmem:[%s3035_s1 + $0xc0] sm:$0xff]  ;;  %v460_v8 = vld [vmem:[%s3035_s1 + $0xb8] sm:$0xff]  ;;  %s1923_s29 = smov 56   ;;  %vm428_vm5 = vcmask 1045504  }
  0x17   : > { %503 = vmatprep.subr.mxu0 %v466_v2  ;;  %s329_s27 = scalar_lea.vmem %s3034_s0, %s1671_s22  ;;  %v459_v15 = vld [vmem:[%s3035_s1 + $0xb0] sm:$0xff]  ;;  %v458_v16 = vld [vmem:[%s3035_s1 + $0xa8] sm:$0xff]  ;;  %s1921_s22 = smov 28   ;;  %v457_v19 = vld [vmem:[%s3035_s1 + $0xa0] sm:$0xff]  ;;  %vm485_vm6 = vcmask 97280   ;;  %vm434_vm7 = vcmask 1041408  }
  0x18   : > { %504 = vmatpush1.msra.mxu0 %v465_v3  ;;  %v2073_v9 = vld [vmem:[%s329_s27 + $0x8] sm:$0x7f]  ;;  %v2075_v10 = vld [vmem:[%s329_s27 + $0x10] sm:$0x7f]  ;;  %v2077_v11 = vld [vmem:[%s329_s27] sm:$0x7f] }
  0x19   : > { %505 = vmatprep.subr.mxu0 %v464_v4  ;;  %v1820_v12 = vpack.i.bf16 %v2073_v9, %v2075_v10  ;;  %v2081_v13 = vld [vmem:[%s329_s27 + $0x18] sm:$0x7f]  ;;  %v350_v14 = vrot.slane %v2077_v11, 1  ;;  %s1922_s27 = smov 84   ;;  %v371_v21 = vrot.slane %v2073_v9, 1  ;;  %v455_v22 = vld [vmem:[%s3035_s1 + $0x90] sm:$0xff] }
  0x1a   : > { %506 = vmatpush1.msra.mxu0 %v463_v5  ;;  %v1825_v18 = vpack.i.bf16 %v2075_v10, %v2081_v13  ;;  %v456_v20 = vld [vmem:[%s3035_s1 + $0x98] sm:$0xff]  ;;  %v454_v23 = vld [vmem:[%s3035_s1 + $0x88] sm:$0xff]  ;;  %v453_v25 = vld [vmem:[%s3035_s1 + $0x80] sm:$0xff]  ;;  %v388_v33 = vrot.slane %v2075_v10, 1  ;;  %v405_v40 = vrot.slane %v2081_v13, 1  ;;  %vm659_vm8 = vcmask 80896  }
  0x1b   : > { %507 = vmatprep.subr.mxu0 %v462_v6  ;;  %1821 = vrot.lane.b32.xlu0 %v1820_v12, %s1921_s22  ;;  %v1830_v17 = vpack.i.bf16 %v2081_v13, %v350_v14  ;;  %v1835_v24 = vpack.i.bf16 %v350_v14, %v2081_v13  ;;  %v452_v26 = vld [vmem:[%s3035_s1 + $0x78] sm:$0xff]  ;;  %v451_v27 = vld [vmem:[%s3035_s1 + $0x70] sm:$0xff]  ;;  %v450_v28 = vld [vmem:[%s3035_s1 + $0x68] sm:$0xff]  ;;  %vm661_vm9 = vcmask 162816   ;;  %vm663_vm10 = vcmask 244736  }
  0x1c   : > { %508 = vmatpush1.msra.mxu0 %v461_v7  ;;  %v449_v29 = vld [vmem:[%s3035_s1 + $0x60] sm:$0xff]  ;;  %v448_v30 = vld [vmem:[%s3035_s1 + $0x58] sm:$0xff]  ;;  %v447_v31 = vld [vmem:[%s3035_s1 + $0x50] sm:$0xff]  ;;  %vm641_vm11 = vcmask 556032   ;;  %vm665_vm12 = vcmask 326656   ;;  %vm667_vm13 = vcmask 408576  }
  0x1d   : > { %509 = vmatprep.subr.mxu0 %v460_v8  ;;  %1831 = vrot.lane.b32.xlu1 %v1830_v17, %s1922_s27  ;;  %v446_v32 = vld [vmem:[%s3035_s1 + $0x48] sm:$0xff]  ;;  %v445_v34 = vld [vmem:[%s3035_s1 + $0x40] sm:$0xff]  ;;  %v444_v35 = vld [vmem:[%s3035_s1 + $0x38] sm:$0xff]  ;;  %vm669_vm14 = vcmask 490496   ;;  %vm671_vm15 = vcmask 572416  }
  0x1e   : > { %510 = vmatpush1.msra.mxu0 %v459_v15  ;;  %v443_v36 = vld [vmem:[%s3035_s1 + $0x30] sm:$0xff]  ;;  %v442_v37 = vld [vmem:[%s3035_s1 + $0x28] sm:$0xff]  ;;  %v441_v38 = vld [vmem:[%s3035_s1 + $0x20] sm:$0xff] }
  0x1f   : > { %511 = vmatprep.subr.mxu0 %v458_v16  ;;  %1826 = vrot.lane.b32.xlu0 %v1825_v18, %s1923_s29  ;;  %v440_v39 = vld [vmem:[%s3035_s1 + $0x18] sm:$0xff]  ;;  %v439_v41 = vld [vmem:[%s3035_s1 + $0x10] sm:$0xff]  ;;  %v438_v42 = vld [vmem:[%s3035_s1 + $0x8] sm:$0xff] }
  0x20   : > { %512 = vmatpush1.msra.mxu0 %v457_v19  ;;  %v437_v43 = vld [vmem:[%s3035_s1] sm:$0xff]  ;;  %v472_v44 = vld [vmem:[%s3035_s1 + $0x118] sm:$0xf]  ;;  %v471_v45 = vld [vmem:[%s3035_s1 + $0x110] sm:$0xf] }
  0x21   : > { %513 = vmatprep.subr.mxu0 %v456_v20  ;;  %372 = vrot.lane.b32.xlu1 %v371_v21, %s1924_s25  ;;  %v470_v46 = vld [vmem:[%s3035_s1 + $0x108] sm:$0xff]  ;;  %v469_v47 = vld [vmem:[%s3035_s1 + $0x100] sm:$0xff] }
  0x22   : > { %514 = vmatpush1.msra.mxu0 %v455_v22 }
  0x23   : > { %515 = vmatprep.subr.mxu0 %v454_v23  ;;  %1836 = vrot.lane.b32.xlu0 %v1835_v24, %s1921_s22 }
  0x24   : > { %516 = vmatpush1.msra.mxu0 %v453_v25 }
  0x25   : > { %517 = vmatprep.subr.mxu0 %v452_v26  ;;  %351 = vrot.lane.b32.xlu1 %v350_v14, %s1924_s25 }
  0x26   : > { %518 = vmatpush1.msra.mxu0 %v451_v27 }
  0x27   : > { %519 = vmatprep.subr.mxu0 %v450_v28  ;;  %382 = vrot.lane.b32.xlu0 %v350_v14, %s1923_s29 }
  0x28   : > { %520 = vmatpush1.msra.mxu0 %v449_v29 }
  0x29   : > { %521 = vmatprep.subr.mxu0 %v448_v30  ;;  %385 = vrot.lane.b32.xlu1 %v371_v21, %s1922_s27 }
  0x2a   : > { %522 = vmatpush1.msra.mxu0 %v447_v31 }
  0x2b   : > { %523 = vmatprep.subr.mxu0 %v446_v32  ;;  %389 = vrot.lane.b32.xlu0 %v388_v33, %s1924_s25  ;;  %v475_v32 = vlaneseq }
  0x2c   : > { %524 = vmatpush1.msra.mxu0 %v445_v34 }
  0x2d   : > { %525 = vmatprep.subr.mxu0 %v444_v35  ;;  %399 = vrot.lane.b32.xlu1 %v371_v21, %s1923_s29  ;;  %v473_v35 = vld [vmem:[%s3036_s2] sm:$0x3]  ;;  %s1926_s29 = smov 108  }
  0x2e   : > { %526 = vmatpush1.msra.mxu0 %v443_v36 }
  0x2f   : > { %527 = vmatprep.subr.mxu0 %v442_v37  ;;  %402 = vrot.lane.b32.xlu0 %v388_v33, %s1922_s27  ;;  %v2215_v33 = vshrl.u32 %v475_v32, 7  ;;  %s3044_s27 = smov 68   ;;  %v887_v32 = vld [vmem:[%s3037_s3 + $0xb0] sm:$0xff] }
  0x30   : > { %528 = vmatpush1.msra.mxu0 %v441_v38 }
  0x31   : > { %529 = vmatprep.subr.mxu0 %v440_v39  ;;  %406 = vrot.lane.b32.xlu1 %v405_v40, %s1924_s25  ;;  %v477_v34 = vsub.s32 0, %v2215_v33  ;;  %v481_v36 = vsub.s32 1, %v2215_v33 }
  0x32   : > { %530 = vmatpush1.msra.mxu0 %v439_v41 }
  0x33   : > { %531 = vmatprep.subr.mxu0 %v438_v42  ;;  %v478_v38 = vrot.slane %v473_v35, %v477_v34  ;;  %v482_v39 = vrot.slane %v473_v35, %v481_v36  ;;  %v953_v35 = vld [vmem:[%s3037_s3 + $0x2c0] sm:$0xff] }
  0x34   : > { %532 = vmatpush1.msra.mxu0 %v437_v43 }
  0x35   : > { %1659 = vmatprep.subr.msk.mxu0 %vm431_vm0, %v472_v44 }
  0x36   : > { %1660 = vmatpush2.msk.msra.mxu0 %vm431_vm0, %v471_v45 }
  0x37   : > { %563 = vmatprep.subr.mxu0 %v470_v46 }
  0x38   : > { %564 = vmatpush2.msra.mxu0 %v469_v47 }
  0x8d   : > { %v1822_v48 = vpop.permute.xlu0 %1821 }
  0x8e   : > { %v1824_v49 = vunpack.i.h.bf16 %v1822_v48  ;;  %v1823_v50 = vunpack.i.l.bf16 %v1822_v48 }
  0x8f   : > { %v1832_v51 = vpop.permute.xlu1 %1831 }
  0x90   : > { %v355_v55 = vsel %vm354_vm1, %v2077_v11, %v1824_v49  ;;  %v375_v56 = vsel %vm354_vm1, %v2073_v9, %v1823_v50  ;;  %v1833_v57 = vunpack.i.l.bf16 %v1832_v51  ;;  %v1834_v62 = vunpack.i.h.bf16 %v1832_v51 }
  0x91   : > { %v1827_v52 = vpop.permute.xlu0 %1826 }
  0x92   : > { %v1829_v53 = vunpack.i.h.bf16 %v1827_v52  ;;  %v1828_v54 = vunpack.i.l.bf16 %v1827_v52 }
  0x93   : > { %v373_v58 = vpop.permute.xlu1 %372 }
  0x94   : > { %v376_v59 = vsel %vm356_vm2, %v375_v56, %v1828_v54  ;;  %v415_v60 = vrot.slane %v373_v58, 2  ;;  %v357_v61 = vsel %vm356_vm2, %v355_v55, %v1829_v53 }
  0x95   : > { %v377_v63 = vsel %vm358_vm3, %v376_v59, %v1833_v57  ;;  %v1837_v0 = vpop.permute.xlu0 %1836  ;;  %v359_v5 = vsel %vm358_vm3, %v357_v61, %v1834_v62 }
  0x96   : > { %v378_v1 = vsel %vm360_vm4, %v377_v63, %v373_v58  ;;  %v1838_v2 = vunpack.i.l.bf16 %v1837_v0  ;;  %v1839_v14 = vunpack.i.h.bf16 %v1837_v0 }
  0x97   : > { %v414_v3 = vrot.slane %v378_v1, 2  ;;  %v352_v4 = vpop.permute.xlu1 %351 }
  0x98   : > { %v361_v6 = vsel %vm360_vm4, %v359_v5, %v352_v4  ;;  %v392_v7 = vsel %vm354_vm1, %v2075_v10, %v1838_v2  ;;  %v430_v8 = vsel %vm428_vm5, %v352_v4, %v415_v60  ;;  %v409_v10 = vsel %vm354_vm1, %v2081_v13, %v1839_v14 }
  0x99   : > { %v383_v9 = vpop.permute.xlu0 %382  ;;  %1661 = vmatprep.mubr.msk.f32.mxu0 %vm485_vm6, %v430_v8  ;;  %v429_v11 = vsel %vm428_vm5, %v361_v6, %v414_v3  ;;  %vm673_vm1 = vcmask 654336  }
  0x9a   : > { %v393_v12 = vsel %vm356_vm2, %v392_v7, %v383_v9  ;;  %566 = vmatmul.mubr.f32.vlgmr.msra.gmra.mxu0 %v429_v11 }
  0x9b   : > { %v386_v15 = vpop.permute.xlu1 %385 }
  0x9c   : > { %v394_v16 = vsel %vm358_vm3, %v393_v12, %v386_v15 }
  0x9d   : > { %v390_v17 = vpop.permute.xlu0 %389 }
  0x9e   : > { %v395_v18 = vsel %vm360_vm4, %v394_v16, %v390_v17  ;;  %v420_v19 = vrot.slane %v390_v17, 4 }
  0x9f   : > { %v419_v20 = vrot.slane %v395_v18, 4  ;;  %v400_v21 = vpop.permute.xlu1 %399  ;;  %v896_v18 = vld [vmem:[%s3037_s3 + $0xf8] sm:$0xff] }
  0xa0   : > { %v410_v22 = vsel %vm356_vm2, %v409_v10, %v400_v21  ;;  %v433_v23 = vsel %vm431_vm0, %v415_v60, %v420_v19  ;;  %1031 = vmatprep.subr.mxu1 %v896_v18  ;;  %v893_v10 = vld [vmem:[%s3037_s3 + $0xe0] sm:$0xff]  ;;  %v892_v21 = vld [vmem:[%s3037_s3 + $0xd8] sm:$0xff]  ;;  %v866_v18 = vld [vmem:[%s3037_s3 + $0x8] sm:$0xff]  ;;  %vm675_vm2 = vcmask 736256  }
  0xa1   : > { %v403_v24 = vpop.permute.xlu0 %402  ;;  %1662 = vmatprep.mubr.msk.f32.mxu0 %vm485_vm6, %v433_v23  ;;  %v432_v25 = vsel %vm431_vm0, %v414_v3, %v419_v20  ;;  %v891_v23 = vld [vmem:[%s3037_s3 + $0xd0] sm:$0xff] }
  0xa2   : > { %v411_v26 = vsel %vm358_vm3, %v410_v22, %v403_v24  ;;  %572 = vmatmul.mubr.f32.gmra.mxu0 %v432_v25  ;;  %v960_v22 = vld [vmem:[%s3037_s3 + $0x2f8] sm:$0xff]  ;;  %v959_v24 = vld [vmem:[%s3037_s3 + $0x2f0] sm:$0xff]  ;;  %v958_v25 = vld [vmem:[%s3037_s3 + $0x2e8] sm:$0xff]  ;;  %vm679_vm3 = vcmask 900096  }
  0xa3   : > { %v407_v27 = vpop.permute.xlu1 %406  ;;  %1102 = vmatprep.subr.mxu0 %v960_v22  ;;  %v930_v22 = vld [vmem:[%s3037_s3 + $0x208] sm:$0xff] }
  0xa4   : > { %v412_v28 = vsel %vm360_vm4, %v411_v26, %v407_v27  ;;  %v425_v29 = vrot.slane %v407_v27, 6  ;;  %v890_v26 = vld [vmem:[%s3037_s3 + $0xc8] sm:$0xff]  ;;  %1103 = vmatpush1.msra.mxu0 %v959_v24  ;;  %v957_v27 = vld [vmem:[%s3037_s3 + $0x2e0] sm:$0xff] }
  0xa5   : > { %v424_v30 = vrot.slane %v412_v28, 6  ;;  %v889_v28 = vld [vmem:[%s3037_s3 + $0xc0] sm:$0xff]  ;;  %1104 = vmatprep.subr.mxu0 %v958_v25  ;;  %v926_v25 = vld [vmem:[%s3037_s3 + $0x1e8] sm:$0xff] }
  0xa6   : > { %v436_v13 = vsel %vm434_vm7, %v420_v19, %v425_v29  ;;  %v895_v19 = vld [vmem:[%s3037_s3 + $0xf0] sm:$0xff]  ;;  %v956_v29 = vld [vmem:[%s3037_s3 + $0x2d8] sm:$0xff]  ;;  %1105 = vmatpush1.msra.mxu0 %v957_v27  ;;  %v929_v24 = vld [vmem:[%s3037_s3 + $0x200] sm:$0xff] }
  0xa7   : > { %1663 = vmatprep.mubr.msk.f32.mxu0 %vm485_vm6, %v436_v13  ;;  %v435_v31 = vsel %vm434_vm7, %v419_v20, %v424_v30  ;;  %v894_v20 = vld [vmem:[%s3037_s3 + $0xe8] sm:$0xff]  ;;  %1032 = vmatpush1.msra.mxu1 %v895_v19  ;;  %v955_v30 = vld [vmem:[%s3037_s3 + $0x2d0] sm:$0xff]  ;;  %v888_v13 = vld [vmem:[%s3037_s3 + $0xb8] sm:$0xff]  ;;  %vm677_vm6 = vcmask 818176  }
  0xa8   : > { %578 = vmatmul.mubr.f32.gmra.mxu0 %v435_v31  ;;  %1033 = vmatprep.subr.mxu1 %v894_v20  ;;  %v954_v31 = vld [vmem:[%s3037_s3 + $0x2c8] sm:$0xff]  ;;  %v932_v19 = vld [vmem:[%s3037_s3 + $0x218] sm:$0xff]  ;;  %v865_v20 = vld [vmem:[%s3037_s3] sm:$0xff] }
  0xa9   : > { %1034 = vmatpush1.msra.mxu1 %v893_v10  ;;  %1106 = vmatprep.subr.mxu0 %v956_v29  ;;  %v931_v10 = vld [vmem:[%s3037_s3 + $0x210] sm:$0xff]  ;;  %v925_v27 = vld [vmem:[%s3037_s3 + $0x1e0] sm:$0xff]  ;;  %v924_v29 = vld [vmem:[%s3037_s3 + $0x1d8] sm:$0xff] }
  0xaa   : > { %1035 = vmatprep.subr.mxu1 %v892_v21  ;;  %1107 = vmatpush1.msra.mxu0 %v955_v30  ;;  %v928_v21 = vld [vmem:[%s3037_s3 + $0x1f8] sm:$0xff]  ;;  %v990_v30 = vld [vmem:[%s3037_s3 + $0x3e8] sm:$0xff] }
  0xab   : > { %1036 = vmatpush1.msra.mxu1 %v891_v23  ;;  %1108 = vmatprep.subr.mxu0 %v954_v31  ;;  %v927_v23 = vld [vmem:[%s3037_s3 + $0x1f0] sm:$0xff]  ;;  %v989_v31 = vld [vmem:[%s3037_s3 + $0x3e0] sm:$0xff] }
  0xac   : > { %1037 = vmatprep.subr.mxu1 %v890_v26  ;;  %1109 = vmatpush1.msra.mxu0 %v953_v35  ;;  %v992_v26 = vld [vmem:[%s3037_s3 + $0x3f8] sm:$0xff] }
  0xad   : > { %1038 = vmatpush1.msra.mxu1 %v889_v28  ;;  %v991_v28 = vld [vmem:[%s3037_s3 + $0x3f0] sm:$0xff]  ;;  %v988_v35 = vld [vmem:[%s3037_s3 + $0x3d8] sm:$0xff] }
  0xae   : > { %1039 = vmatprep.subr.mxu1 %v888_v13  ;;  %v923_v13 = vld [vmem:[%s3037_s3 + $0x1d0] sm:$0xff] }
  0xaf   : > { %1040 = vmatpush1.msra.mxu1 %v887_v32  ;;  %v922_v32 = vld [vmem:[%s3037_s3 + $0x1c8] sm:$0xff] }
 0x15a   : > { %v567_v37 = vpop.f32.mrf.mxu0 }
 0x15b   : > { %v568_v41 = vadd.f32 %v567_v37, %v478_v38  ;;  %v886_v37 = vld [vmem:[%s3037_s3 + $0xa8] sm:$0xff] }
 0x15c   : > { %v569_v40 = vpop.f32.mrf.mxu0  ;;  %1041 = vmatprep.subr.mxu1 %v886_v37  ;;  %v921_v37 = vld [vmem:[%s3037_s3 + $0x1c0] sm:$0xff] }
 0x15d   : > { %v570_v43 = vadd.f32 %v569_v40, %v482_v39  ;;  %v588_v46 = vrot.slane %v568_v41, 6  ;;  %v951_v40 = vld [vmem:[%s3037_s3 + $0x2b0] sm:$0xff] }
 0x15f   : > { %v591_v49 = vrot.slane %v570_v43, 6 }
 0x162   : > { %v573_v42 = vpop.f32.mrf.mxu0 }
 0x163   : > { %v574_v44 = vadd.f32 %v573_v42, %v478_v38  ;;  %v950_v42 = vld [vmem:[%s3037_s3 + $0x2a8] sm:$0xff] }
 0x164   : > { %v575_v45 = vpop.f32.mrf.mxu0 }
 0x165   : > { %v589_v47 = vrot.slane %v574_v44, 6  ;;  %v576_v48 = vadd.f32 %v575_v45, %v482_v39  ;;  %v882_v45 = vld [vmem:[%s3037_s3 + $0x88] sm:$0xff] }
 0x167   : > { %v592_v50 = vrot.slane %v576_v48, 6  ;;  %v590_v51 = vsel %vm434_vm7, %v588_v46, %v589_v47  ;;  %v948_v46 = vld [vmem:[%s3037_s3 + $0x298] sm:$0xff]  ;;  %v881_v47 = vld [vmem:[%s3037_s3 + $0x80] sm:$0xff] }
 0x168   : > { %v579_v52 = vpop.f32.mrf.mxu0  ;;  %v596_v53 = vmax.f32 %v568_v41, %v590_v51  ;;  %v884_v41 = vld [vmem:[%s3037_s3 + $0x98] sm:$0xff]  ;;  %v879_v51 = vld [vmem:[%s3037_s3 + $0x70] sm:$0xff] }
 0x169   : > { %v580_v54 = vadd.f32 %v579_v52, %v478_v38  ;;  %v593_v55 = vsel %vm434_vm7, %v591_v49, %v592_v50  ;;  %v952_v38 = vld [vmem:[%s3037_s3 + $0x2b8] sm:$0xff]  ;;  %v946_v50 = vld [vmem:[%s3037_s3 + $0x288] sm:$0xff]  ;;  %v945_v52 = vld [vmem:[%s3037_s3 + $0x280] sm:$0xff] }
 0x16a   : > { %v581_v56 = vpop.f32.mrf.mxu0  ;;  %609 = vrot.lane.b32.xlu0 %v596_v53, %s1925_s14  ;;  %v597_v57 = vmax.f32 %v570_v43, %v593_v55  ;;  %v883_v43 = vld [vmem:[%s3037_s3 + $0x90] sm:$0xff]  ;;  %1110 = vmatprep.subr.mxu0 %v952_v38  ;;  %v880_v49 = vld [vmem:[%s3037_s3 + $0x78] sm:$0xff]  ;;  %v877_v55 = vld [vmem:[%s3037_s3 + $0x60] sm:$0xff] }
 0x16b   : > { %v600_v58 = vrot.slane %v580_v54, 6  ;;  %v582_v59 = vadd.f32 %v581_v56, %v482_v39  ;;  %v885_v39 = vld [vmem:[%s3037_s3 + $0xa0] sm:$0xff]  ;;  %1111 = vmatpush1.msra.mxu0 %v951_v40  ;;  %v943_v56 = vld [vmem:[%s3037_s3 + $0x270] sm:$0xff]  ;;  %v986_v40 = vld [vmem:[%s3037_s3 + $0x3c8] sm:$0xff] }
 0x16c   : > { %614 = vrot.lane.b32.xlu1 %v597_v57, %s1925_s14  ;;  %1042 = vmatpush1.msra.mxu1 %v885_v39  ;;  %v987_v38 = vld [vmem:[%s3037_s3 + $0x3d0] sm:$0xff]  ;;  %v920_v39 = vld [vmem:[%s3037_s3 + $0x1b8] sm:$0xff] }
 0x16d   : > { %v606_v60 = vmax.f32 %v580_v54, %v600_v58  ;;  %v601_v61 = vrot.slane %v582_v59, 6  ;;  %v604_v62 = vmax.f32 %v574_v44, %v600_v58  ;;  %v949_v44 = vld [vmem:[%s3037_s3 + $0x2a0] sm:$0xff]  ;;  %1043 = vmatprep.subr.mxu1 %v884_v41  ;;  %1112 = vmatprep.subr.mxu0 %v950_v42  ;;  %v944_v54 = vld [vmem:[%s3037_s3 + $0x278] sm:$0xff]  ;;  %v942_v58 = vld [vmem:[%s3037_s3 + $0x268] sm:$0xff] }
 0x16e   : > { %1044 = vmatpush1.msra.mxu1 %v883_v43  ;;  %1113 = vmatpush1.msra.mxu0 %v949_v44  ;;  %v919_v41 = vld [vmem:[%s3037_s3 + $0x1b0] sm:$0xff]  ;;  %v985_v42 = vld [vmem:[%s3037_s3 + $0x3c0] sm:$0xff]  ;;  %v918_v43 = vld [vmem:[%s3037_s3 + $0x1a8] sm:$0xff] }
 0x16f   : > { %684 = vrot.lane.b32.xlu0 %v604_v62, %s1925_s14  ;;  %v607_v63 = vmax.f32 %v582_v59, %v601_v61  ;;  %v605_v0 = vmax.f32 %v576_v48, %v601_v61  ;;  %v947_v48 = vld [vmem:[%s3037_s3 + $0x290] sm:$0xff]  ;;  %1045 = vmatprep.subr.mxu1 %v882_v45  ;;  %v874_v61 = vld [vmem:[%s3037_s3 + $0x48] sm:$0xff]  ;;  %v984_v44 = vld [vmem:[%s3037_s3 + $0x3b8] sm:$0xff] }
 0x170   : > { %686 = vrot.lane.b32.xlu1 %v606_v60, %s1925_s14  ;;  %1114 = vmatprep.subr.mxu0 %v948_v46  ;;  %v875_v59 = vld [vmem:[%s3037_s3 + $0x50] sm:$0xff]  ;;  %v917_v45 = vld [vmem:[%s3037_s3 + $0x1a0] sm:$0xff] }
 0x171   : > { %1046 = vmatpush1.msra.mxu1 %v881_v47  ;;  %1115 = vmatpush1.msra.mxu0 %v947_v48  ;;  %v983_v46 = vld [vmem:[%s3037_s3 + $0x3b0] sm:$0xff]  ;;  %v916_v47 = vld [vmem:[%s3037_s3 + $0x198] sm:$0xff]  ;;  %v982_v48 = vld [vmem:[%s3037_s3 + $0x3a8] sm:$0xff] }
 0x172   : > { %1047 = vmatprep.subr.mxu1 %v880_v49  ;;  %1116 = vmatprep.subr.mxu0 %v946_v50  ;;  %v915_v49 = vld [vmem:[%s3037_s3 + $0x190] sm:$0xff]  ;;  %v981_v50 = vld [vmem:[%s3037_s3 + $0x3a0] sm:$0xff] }
 0x173   : > { %696 = vrot.lane.b32.xlu0 %v607_v63, %s1925_s14  ;;  %1048 = vmatpush1.msra.mxu1 %v879_v51 }
 0x174   : > { %694 = vrot.lane.b32.xlu1 %v605_v0, %s1925_s14  ;;  %1117 = vmatpush1.msra.mxu0 %v945_v52 }
 0x175   : > { %1118 = vmatprep.subr.mxu0 %v944_v54  ;;  %v980_v54 = vld [vmem:[%s3037_s3 + $0x398] sm:$0xff] }
 0x176   : > { %1119 = vmatpush1.msra.mxu0 %v943_v56  ;;  %v979_v56 = vld [vmem:[%s3037_s3 + $0x390] sm:$0xff] }
 0x177   : > { %1120 = vmatprep.subr.mxu0 %v942_v58  ;;  %v978_v58 = vld [vmem:[%s3037_s3 + $0x388] sm:$0xff] }
 0x1dc   : > { %v610_v1 = vpop.permute.xlu0 %609 }
 0x1dd   : > { %v2234_v2 = vmax.f32 %v596_v53, %v610_v1  ;;  %v872_v1 = vld [vmem:[%s3037_s3 + $0x38] sm:$0xff] }
 0x1de   : > { %v615_v3 = vpop.permute.xlu1 %614 }
 0x1df   : > { %623 = vrot.lane.b32.xlu1 %v2234_v2, %s1926_s29  ;;  %620 = vrot.lane.b32.xlu0 %v2234_v2, %s1925_s14  ;;  %v617_v4 = vmax.f32 %v596_v53, %v615_v3  ;;  %v618_v5 = vmax.f32 %v597_v57, %v615_v3  ;;  %v878_v53 = vld [vmem:[%s3037_s3 + $0x68] sm:$0xff]  ;;  %v876_v57 = vld [vmem:[%s3037_s3 + $0x58] sm:$0xff] }
 0x1e0   : > { %1049 = vmatprep.subr.mxu1 %v878_v53  ;;  %v938_v3 = vld [vmem:[%s3037_s3 + $0x248] sm:$0xff] }
 0x1e1   : > { %v685_v8 = vpop.permute.xlu0 %684  ;;  %1050 = vmatpush1.msra.mxu1 %v877_v55  ;;  %v914_v53 = vld [vmem:[%s3037_s3 + $0x188] sm:$0xff]  ;;  %v913_v55 = vld [vmem:[%s3037_s3 + $0x180] sm:$0xff] }
 0x1e2   : > { %v687_v6 = vpop.permute.xlu1 %686  ;;  %v2254_v9 = vmax.f32 %v604_v62, %v685_v8  ;;  %1051 = vmatprep.subr.mxu1 %v876_v57  ;;  %v936_v8 = vld [vmem:[%s3037_s3 + $0x238] sm:$0xff] }
 0x1e3   : > { %629 = vrot.lane.b32.xlu1 %v2234_v2, %s1927_s16  ;;  %626 = vrot.lane.b32.xlu0 %v2234_v2, %s1928_s18  ;;  %v2249_v7 = vmax.f32 %v606_v60, %v687_v6  ;;  %v870_v6 = vld [vmem:[%s3037_s3 + $0x28] sm:$0xff]  ;;  %v912_v57 = vld [vmem:[%s3037_s3 + $0x178] sm:$0xff] }
 0x1e4   : > { %1052 = vmatpush1.msra.mxu1 %v875_v59  ;;  %v911_v59 = vld [vmem:[%s3037_s3 + $0x170] sm:$0xff] }
 0x1e5   : > { %v697_v14 = vpop.permute.xlu0 %696  ;;  %1053 = vmatprep.subr.mxu1 %v874_v61 }
 0x1e6   : > { %v695_v11 = vpop.permute.xlu1 %694  ;;  %v703_v15 = vmax.f32 %v607_v63, %v697_v14  ;;  %v702_v17 = vmax.f32 %v606_v60, %v697_v14  ;;  %v941_v60 = vld [vmem:[%s3037_s3 + $0x260] sm:$0xff]  ;;  %v868_v14 = vld [vmem:[%s3037_s3 + $0x18] sm:$0xff] }
 0x1e7   : > { %632 = vrot.lane.b32.xlu0 %v2234_v2, %s1929_s17  ;;  %637 = vrot.lane.b32.xlu1 %v617_v4, %s3044_s27  ;;  %v701_v12 = vmax.f32 %v605_v0, %v695_v11  ;;  %v700_v16 = vmax.f32 %v604_v62, %v695_v11  ;;  %v940_v62 = vld [vmem:[%s3037_s3 + $0x258] sm:$0xff]  ;;  %v873_v63 = vld [vmem:[%s3037_s3 + $0x40] sm:$0xff] }
 0x1e8   : > { %v939_v0 = vld [vmem:[%s3037_s3 + $0x250] sm:$0xff]  ;;  %1121 = vmatpush1.msra.mxu0 %v941_v60  ;;  %1054 = vmatpush1.msra.mxu1 %v873_v63  ;;  %v869_v11 = vld [vmem:[%s3037_s3 + $0x20] sm:$0xff]  ;;  %v910_v63 = vld [vmem:[%s3037_s3 + $0x168] sm:$0xff] }
 0x1e9   : > { %v871_v4 = vld [vmem:[%s3037_s3 + $0x30] sm:$0xff]  ;;  %1122 = vmatprep.subr.mxu0 %v940_v62  ;;  %1055 = vmatprep.subr.mxu1 %v872_v1  ;;  %v977_v60 = vld [vmem:[%s3037_s3 + $0x380] sm:$0xff] }
 0x1ea   : > { %1123 = vmatpush1.msra.mxu0 %v939_v0  ;;  %1056 = vmatpush1.msra.mxu1 %v871_v4  ;;  %v976_v0 = vld [vmem:[%s3037_s3 + $0x378] sm:$0xff]  ;;  %v909_v1 = vld [vmem:[%s3037_s3 + $0x160] sm:$0xff] }
 0x1eb   : > { %639 = vrot.lane.b32.xlu0 %v618_v5, %s3044_s27  ;;  %644 = vrot.lane.b32.xlu1 %v618_v5, %s1931_s21  ;;  %v908_v4 = vld [vmem:[%s3037_s3 + $0x158] sm:$0xff] }
 0x1ec   : > { %1124 = vmatprep.subr.mxu0 %v938_v3  ;;  %1057 = vmatprep.subr.mxu1 %v870_v6  ;;  %v975_v3 = vld [vmem:[%s3037_s3 + $0x370] sm:$0xff] }
 0x1ed   : > { %1058 = vmatpush1.msra.mxu1 %v869_v11  ;;  %v907_v6 = vld [vmem:[%s3037_s3 + $0x150] sm:$0xff] }
 0x1ee   : > { %1059 = vmatprep.subr.mxu1 %v868_v14  ;;  %v906_v14 = vld [vmem:[%s3037_s3 + $0x148] sm:$0xff] }
 0x1ef   : > { %647 = vrot.lane.b32.xlu0 %v618_v5, %s1932_s23  ;;  %650 = vrot.lane.b32.xlu1 %v618_v5, %s1933_s24 }
 0x1f3   : > { %653 = vrot.lane.b32.xlu0 %v618_v5, %s1921_s22  ;;  %708 = vrot.lane.b32.xlu1 %v2249_v7, %s1925_s14 }
 0x1f7   : > { %706 = vrot.lane.b32.xlu0 %v2254_v9, %s1925_s14  ;;  %712 = vrot.lane.b32.xlu1 %v2254_v9, %s1926_s29 }
 0x1fb   : > { %714 = vrot.lane.b32.xlu0 %v2249_v7, %s1926_s29  ;;  %720 = vrot.lane.b32.xlu1 %v2249_v7, %s1928_s18 }
 0x1ff   : > { %718 = vrot.lane.b32.xlu0 %v2254_v9, %s1928_s18  ;;  %724 = vrot.lane.b32.xlu1 %v2254_v9, %s1927_s16  ;;  %s1940_s18 = smov 32  }
 0x203   : > { %726 = vrot.lane.b32.xlu0 %v2249_v7, %s1927_s16  ;;  %732 = vrot.lane.b32.xlu1 %v2249_v7, %s1929_s17 }
 0x207   : > { %730 = vrot.lane.b32.xlu0 %v2254_v9, %s1929_s17  ;;  %742 = vrot.lane.b32.xlu1 %v701_v12, %s3044_s27  ;;  %s1941_s17 = smov 80  }
 0x20b   : > { %740 = vrot.lane.b32.xlu0 %v700_v16, %s3044_s27  ;;  %746 = vrot.lane.b32.xlu1 %v703_v15, %s3044_s27  ;;  %v867_v16 = vld [vmem:[%s3037_s3 + $0x10] sm:$0xff] }
 0x20c   : > { %1060 = vmatpush1.msra.mxu1 %v867_v16  ;;  %v905_v16 = vld [vmem:[%s3037_s3 + $0x140] sm:$0xff] }
 0x20d   : > { %1061 = vmatprep.subr.mxu1 %v866_v18  ;;  %v903_v18 = vld [vmem:[%s3037_s3 + $0x130] sm:$0xff] }
 0x20e   : > { %1062 = vmatpush1.msra.mxu1 %v865_v20 }
 0x20f   : > { %744 = vrot.lane.b32.xlu0 %v702_v17, %s3044_s27  ;;  %752 = vrot.lane.b32.xlu1 %v701_v12, %s1931_s21  ;;  %v933_v17 = vld [vmem:[%s3037_s3 + $0x220] sm:$0xff] }
 0x210   : > { %1063 = vmatprep.subr.mxu1 %v928_v21 }
 0x211   : > { %1064 = vmatpush2.msra.mxu1 %v927_v23 }
 0x212   : > { %1065 = vmatprep.subr.mxu1 %v926_v25 }
 0x213   : > { %754 = vrot.lane.b32.xlu0 %v703_v15, %s1931_s21  ;;  %760 = vrot.lane.b32.xlu1 %v703_v15, %s1932_s23 }
 0x214   : > { %1066 = vmatpush2.msra.mxu1 %v925_v27 }
 0x215   : > { %1067 = vmatprep.subr.mxu1 %v924_v29 }
 0x216   : > { %1068 = vmatpush2.msra.mxu1 %v923_v13 }
 0x217   : > { %758 = vrot.lane.b32.xlu0 %v701_v12, %s1932_s23  ;;  %764 = vrot.lane.b32.xlu1 %v701_v12, %s1933_s24  ;;  %s1942_s23 = smov [#allocation2]  }
 0x218   : > { %1069 = vmatprep.subr.mxu1 %v922_v32 }
 0x219   : > { %1070 = vmatpush2.msra.mxu1 %v921_v37 }
 0x21a   : > { %1071 = vmatprep.subr.mxu1 %v920_v39 }
 0x21b   : > { %766 = vrot.lane.b32.xlu0 %v703_v15, %s1933_s24  ;;  %772 = vrot.lane.b32.xlu1 %v703_v15, %s1921_s22 }
 0x21c   : > { %1072 = vmatpush2.msra.mxu1 %v919_v41 }
 0x21d   : > { %1073 = vmatprep.subr.mxu1 %v918_v43 }
 0x21e   : > { %1074 = vmatpush2.msra.mxu1 %v917_v45 }
 0x21f   : > { %770 = vrot.lane.b32.xlu0 %v701_v12, %s1921_s22  ;;  %776 = vrot.lane.b32.xlu1 %v701_v12, %s1934_s26  ;;  %v935_v12 = vld [vmem:[%s3037_s3 + $0x230] sm:$0xff]  ;;  %s1935_s22 = smov 120  }
 0x220   : > { %1075 = vmatprep.subr.mxu1 %v916_v47 }
 0x221   : > { %1076 = vmatpush2.msra.mxu1 %v915_v49 }
 0x222   : > { %1077 = vmatprep.subr.mxu1 %v914_v53 }
 0x223   : > { %778 = vrot.lane.b32.xlu0 %v703_v15, %s1934_s26  ;;  %656 = vrot.lane.b32.xlu1 %v618_v5, %s1934_s26  ;;  %v937_v5 = vld [vmem:[%s3037_s3 + $0x240] sm:$0xff]  ;;  %v934_v15 = vld [vmem:[%s3037_s3 + $0x228] sm:$0xff]  ;;  %s1936_s26 = smov 104  }
 0x224   : > { %1125 = vmatpush1.msra.mxu0 %v937_v5  ;;  %1078 = vmatpush2.msra.mxu1 %v913_v55  ;;  %v974_v5 = vld [vmem:[%s3037_s3 + $0x368] sm:$0xff] }
 0x225   : > { %1126 = vmatprep.subr.mxu0 %v936_v8  ;;  %1079 = vmatprep.subr.mxu1 %v912_v57  ;;  %v973_v8 = vld [vmem:[%s3037_s3 + $0x360] sm:$0xff] }
 0x226   : > { %1127 = vmatpush1.msra.mxu0 %v935_v12  ;;  %1080 = vmatpush2.msra.mxu1 %v911_v59 }
 0x227   : > { %1128 = vmatprep.subr.mxu0 %v934_v15  ;;  %1081 = vmatprep.subr.mxu1 %v910_v63  ;;  %v972_v15 = vld [vmem:[%s3037_s3 + $0x358] sm:$0xff] }
 0x228   : > { %1129 = vmatpush1.msra.mxu0 %v933_v17  ;;  %1082 = vmatpush2.msra.mxu1 %v909_v1  ;;  %v904_v17 = vld [vmem:[%s3037_s3 + $0x138] sm:$0xff] }
 0x229   : > { %1130 = vmatprep.subr.mxu0 %v932_v19  ;;  %1083 = vmatprep.subr.mxu1 %v908_v4 }
 0x22a   : > { %1131 = vmatpush1.msra.mxu0 %v931_v10  ;;  %1084 = vmatpush2.msra.mxu1 %v907_v6  ;;  %v902_v10 = vld [vmem:[%s3037_s3 + $0x128] sm:$0xff]  ;;  %v901_v6 = vld [vmem:[%s3037_s3 + $0x120] sm:$0xff] }
 0x22b   : > { %1132 = vmatprep.subr.mxu0 %v930_v22  ;;  %1085 = vmatprep.subr.mxu1 %v906_v14 }
 0x22c   : > { %1133 = vmatpush1.msra.mxu0 %v929_v24  ;;  %1086 = vmatpush2.msra.mxu1 %v905_v16 }
 0x22d   : > { %1134 = vmatprep.subr.mxu0 %v992_v26  ;;  %1087 = vmatprep.subr.mxu1 %v904_v17  ;;  %v900_v17 = vld [vmem:[%s3037_s3 + $0x118] sm:$0xff] }
 0x22e   : > { %1135 = vmatpush2.msra.mxu0 %v991_v28  ;;  %1088 = vmatpush2.msra.mxu1 %v903_v18  ;;  %v970_v18 = vld [vmem:[%s3037_s3 + $0x348] sm:$0xff] }
 0x22f   : > { %1136 = vmatprep.subr.mxu0 %v990_v30  ;;  %1089 = vmatprep.subr.mxu1 %v902_v10 }
 0x230   : > { %1137 = vmatpush2.msra.mxu0 %v989_v31  ;;  %1090 = vmatpush2.msra.mxu1 %v901_v6 }
 0x231   : > { %1138 = vmatprep.subr.mxu0 %v988_v35  ;;  %1091 = vmatprep.subr.mxu1 %v900_v17 }
 0x232   : > { %1139 = vmatpush2.msra.mxu0 %v987_v38 }
 0x233   : > { %1140 = vmatprep.subr.mxu0 %v986_v40 }
 0x234   : > { %1141 = vmatpush2.msra.mxu0 %v985_v42 }
 0x235   : > { %1142 = vmatprep.subr.mxu0 %v984_v44 }
 0x236   : > { %1143 = vmatpush2.msra.mxu0 %v983_v46 }
 0x237   : > { %1144 = vmatprep.subr.mxu0 %v982_v48 }
 0x238   : > { %1145 = vmatpush2.msra.mxu0 %v981_v50 }
 0x239   : > { %1146 = vmatprep.subr.mxu0 %v980_v54 }
 0x23a   : > { %1147 = vmatpush2.msra.mxu0 %v979_v56 }
 0x23b   : > { %1148 = vmatprep.subr.mxu0 %v978_v58 }
 0x23c   : > { %1149 = vmatpush2.msra.mxu0 %v977_v60 }
 0x23d   : > { %1150 = vmatprep.subr.mxu0 %v976_v0 }
 0x23e   : > { %1151 = vmatpush2.msra.mxu0 %v975_v3 }
 0x23f   : > { %1152 = vmatprep.subr.mxu0 %v974_v5 }
 0x240   : > { %1153 = vmatpush2.msra.mxu0 %v973_v8  ;;  %v971_v8 = vld [vmem:[%s3037_s3 + $0x350] sm:$0xff] }
 0x241   : > { %1154 = vmatprep.subr.mxu0 %v972_v15 }
 0x242   : > { %1155 = vmatpush2.msra.mxu0 %v971_v8 }
 0x243   : > { %1156 = vmatprep.subr.mxu0 %v970_v18 }
 0x251   : > { %v2552_v51 = vpop.permute.xlu1 %623  ;;  %v2554_v52 = vpop.permute.xlu0 %620 }
 0x252   : > { %v660_v41 = vsel %vm659_vm8, %v2234_v2, %v2554_v52 }
 0x253   : > { %v662_v44 = vsel %vm661_vm9, %v660_v41, %v2552_v51 }
 0x255   : > { %v2580_v61 = vpop.permute.xlu1 %629  ;;  %v2582_v62 = vpop.permute.xlu0 %626 }
 0x256   : > { %v664_v48 = vsel %vm663_vm10, %v662_v44, %v2582_v62 }
 0x259   : > { %v2608_v11 = vpop.permute.xlu0 %632  ;;  %v638_v12 = vpop.permute.xlu1 %637 }
 0x25d   : > { %v640_v19 = vpop.permute.xlu0 %639  ;;  %v645_v20 = vpop.permute.xlu1 %644 }
 0x25e   : > { %v642_v50 = vsel %vm641_vm11, %v638_v12, %v640_v19  ;;  %v899_v19 = vld [vmem:[%s3037_s3 + $0x110] sm:$0xff] }
 0x25f   : > { %1092 = vmatpush2.msra.mxu1 %v899_v19  ;;  %v1012_v19 = vld [vmem:[%s3037_s3 + $0x498] sm:$0xff] }
 0x261   : > { %v2628_v21 = vpop.permute.xlu0 %647  ;;  %v2630_v22 = vpop.permute.xlu1 %650 }
 0x265   : > { %v2632_v23 = vpop.permute.xlu0 %653  ;;  %v709_v24 = vpop.permute.xlu1 %708 }
 0x266   : > { %v783_v43 = vsel %vm659_vm8, %v2249_v7, %v709_v24  ;;  %v666_v7 = vsel %vm665_vm12, %v664_v48, %v2580_v61  ;;  %v898_v24 = vld [vmem:[%s3037_s3 + $0x108] sm:$0xff] }
 0x267   : > { %v668_v55 = vsel %vm667_vm13, %v666_v7, %v2608_v11  ;;  %1093 = vmatprep.subr.mxu1 %v898_v24 }
 0x268   : > { %v670_v58 = vsel %vm669_vm14, %v668_v55, %v642_v50 }
 0x269   : > { %v707_v25 = vpop.permute.xlu0 %706  ;;  %v713_v26 = vpop.permute.xlu1 %712  ;;  %v672_v3 = vsel %vm671_vm15, %v670_v58, %v645_v20 }
 0x26a   : > { %v782_v42 = vsel %vm659_vm8, %v2254_v9, %v707_v25  ;;  %v674_v11 = vsel %vm673_vm1, %v672_v3, %v2628_v21  ;;  %v969_v21 = vld [vmem:[%s3037_s3 + $0x340] sm:$0xff]  ;;  %v968_v25 = vld [vmem:[%s3037_s3 + $0x338] sm:$0xff]  ;;  %vm839_vm8 = vcmask 1046528  }
 0x26b   : > { %v784_v49 = vsel %vm661_vm9, %v782_v42, %v713_v26  ;;  %1157 = vmatpush2.msra.mxu0 %v969_v21  ;;  %v964_v42 = vld [vmem:[%s3037_s3 + $0x318] sm:$0xff] }
 0x26c   : > { %1158 = vmatprep.subr.mxu0 %v968_v25  ;;  %v1010_v25 = vld [vmem:[%s3037_s3 + $0x488] sm:$0xff] }
 0x26d   : > { %v715_v27 = vpop.permute.xlu0 %714  ;;  %v721_v28 = vpop.permute.xlu1 %720 }
 0x26e   : > { %v785_v45 = vsel %vm661_vm9, %v783_v43, %v715_v27  ;;  %v676_v27 = vsel %vm675_vm2, %v674_v11, %v2630_v22  ;;  %v966_v22 = vld [vmem:[%s3037_s3 + $0x328] sm:$0xff] }
 0x26f   : > { %v787_v9 = vsel %vm663_vm10, %v785_v45, %v721_v28  ;;  %v963_v45 = vld [vmem:[%s3037_s3 + $0x310] sm:$0xff] }
 0x271   : > { %v719_v29 = vpop.permute.xlu0 %718  ;;  %v725_v30 = vpop.permute.xlu1 %724 }
 0x272   : > { %v786_v2 = vsel %vm663_vm10, %v784_v49, %v719_v29  ;;  %v897_v29 = vld [vmem:[%s3037_s3 + $0x100] sm:$0xff]  ;;  %vm817_vm10 = vcmask 1042432  }
 0x273   : > { %v788_v56 = vsel %vm665_vm12, %v786_v2, %v725_v30  ;;  %v967_v30 = vld [vmem:[%s3037_s3 + $0x330] sm:$0xff]  ;;  %1094 = vmatpush2.msra.mxu1 %v897_v29  ;;  %v962_v2 = vld [vmem:[%s3037_s3 + $0x308] sm:$0xff] }
 0x274   : > { %1159 = vmatpush2.msra.mxu0 %v967_v30  ;;  %v1008_v30 = vld [vmem:[%s3037_s3 + $0x478] sm:$0xff] }
 0x275   : > { %v727_v13 = vpop.permute.xlu0 %726  ;;  %v733_v31 = vpop.permute.xlu1 %732  ;;  %1160 = vmatprep.subr.mxu0 %v966_v22  ;;  %v1004_v22 = vld [vmem:[%s3037_s3 + $0x458] sm:$0xff] }
 0x276   : > { %v789_v51 = vsel %vm665_vm12, %v787_v9, %v727_v13  ;;  %v678_v13 = vsel %vm677_vm6, %v676_v27, %v2632_v23  ;;  %v965_v23 = vld [vmem:[%s3037_s3 + $0x320] sm:$0xff] }
 0x277   : > { %v791_v60 = vsel %vm667_vm13, %v789_v51, %v733_v31  ;;  %1161 = vmatpush2.msra.mxu0 %v965_v23  ;;  %v961_v9 = vld [vmem:[%s3037_s3 + $0x300] sm:$0xff]  ;;  %v1000_v23 = vld [vmem:[%s3037_s3 + $0x438] sm:$0xff] }
 0x278   : > { %1162 = vmatprep.subr.mxu0 %v964_v42  ;;  %v997_v42 = vld [vmem:[%s3037_s3 + $0x420] sm:$0xff] }
 0x279   : > { %v731_v32 = vpop.permute.xlu0 %730  ;;  %v743_v35 = vpop.permute.xlu1 %742  ;;  %1163 = vmatpush2.msra.mxu0 %v963_v45  ;;  %v994_v45 = vld [vmem:[%s3037_s3 + $0x408] sm:$0xff] }
 0x27a   : > { %v790_v59 = vsel %vm667_vm13, %v788_v56, %v731_v32  ;;  %1164 = vmatprep.subr.mxu0 %v962_v2 }
 0x27b   : > { %1165 = vmatpush2.msra.mxu0 %v961_v9 }
 0x27d   : > { %v741_v37 = vpop.permute.xlu0 %740  ;;  %v747_v38 = vpop.permute.xlu1 %746 }
 0x27e   : > { %v748_v52 = vsel %vm641_vm11, %v741_v37, %v743_v35  ;;  %v1014_v37 = vld [vmem:[%s3037_s3 + $0x4a8] sm:$0xff] }
 0x27f   : > { %v792_v61 = vsel %vm669_vm14, %v790_v59, %v748_v52  ;;  %1183 = vmatprep.subr.mxu1 %v1014_v37  ;;  %v1003_v37 = vld [vmem:[%s3037_s3 + $0x450] sm:$0xff] }
 0x281   : > { %v745_v39 = vpop.permute.xlu0 %744  ;;  %v753_v40 = vpop.permute.xlu1 %752 }
 0x282   : > { %v749_v57 = vsel %vm641_vm11, %v745_v39, %v747_v38  ;;  %v794_v62 = vsel %vm671_vm15, %v792_v61, %v753_v40 }
 0x283   : > { %v793_v63 = vsel %vm669_vm14, %v791_v60, %v749_v57  ;;  %v1938_v60 = vmov 0.0  }
 0x284   : > { %1724 = vmatprep.subr.mxu0 %v1938_v60 }
 0x285   : > { %v755_v46 = vpop.permute.xlu0 %754  ;;  %v761_v47 = vpop.permute.xlu1 %760 }
 0x286   : > { %v795_v4 = vsel %vm671_vm15, %v793_v63, %v755_v46  ;;  %vm828_vm15 = vcmask 982016  }
 0x287   : > { %v797_v12 = vsel %vm673_vm1, %v795_v4, %v761_v47 }
 0x289   : > { %v759_v53 = vpop.permute.xlu0 %758  ;;  %v765_v54 = vpop.permute.xlu1 %764 }
 0x28a   : > { %v796_v5 = vsel %vm673_vm1, %v794_v62, %v759_v53 }
 0x28b   : > { %v798_v14 = vsel %vm675_vm2, %v796_v5, %v765_v54 }
 0x28d   : > { %v767_v0 = vpop.permute.xlu0 %766  ;;  %v773_v1 = vpop.permute.xlu1 %772 }
 0x28e   : > { %v799_v20 = vsel %vm675_vm2, %v797_v12, %v767_v0  ;;  %vm833_vm2 = vcmask 785408  }
 0x28f   : > { %v801_v31 = vsel %vm677_vm6, %v799_v20, %v773_v1  ;;  %v1011_v20 = vld [vmem:[%s3037_s3 + $0x490] sm:$0xff] }
 0x291   : > { %v771_v15 = vpop.permute.xlu0 %770  ;;  %v777_v16 = vpop.permute.xlu1 %776 }
 0x292   : > { %v800_v10 = vsel %vm677_vm6, %v798_v14, %v771_v15  ;;  %vm1340_vm6 = vcmask 523264  }
 0x293   : > { %v802_v26 = vsel %vm679_vm3, %v800_v10, %v777_v16  ;;  %v1013_v16 = vld [vmem:[%s3037_s3 + $0x4a0] sm:$0xff] }
 0x294   : > { %v2691_v28 = vmax.f32 %v802_v26, 0.0 }
 0x295   : > { %v779_v32 = vpop.permute.xlu0 %778  ;;  %v657_v35 = vpop.permute.xlu1 %656 }
 0x296   : > { %v803_v38 = vsel %vm679_vm3, %v801_v31, %v779_v32  ;;  %v680_v39 = vsel %vm679_vm3, %v678_v13, %v657_v35  ;;  %v807_v43 = vrot.slane %v2691_v28, 4  ;;  %v840_v44 = vrot.slane %v2691_v28, 1  ;;  %v1007_v31 = vld [vmem:[%s3037_s3 + $0x470] sm:$0xff]  ;;  %v1006_v32 = vld [vmem:[%s3037_s3 + $0x468] sm:$0xff]  ;;  %v1005_v35 = vld [vmem:[%s3037_s3 + $0x460] sm:$0xff] }
 0x297   : > { %v805_v40 = vmax.f32 %v803_v38, 0.0  ;;  %v681_v41 = vmax.f32 %v680_v39, 0.0  ;;  %v818_v50 = vrot.slane %v2691_v28, 5  ;;  %v850_v58 = vrot.slane %v2691_v28, 2  ;;  %v1002_v38 = vld [vmem:[%s3037_s3 + $0x448] sm:$0xff]  ;;  %v1001_v39 = vld [vmem:[%s3037_s3 + $0x440] sm:$0xff] }
 0x298   : > { %vm1027_vm3 = vcmask 719872  }
 0x299   : > { %v819_v46 = vrot.slane %v805_v40, 5  ;;  %v841_v47 = vrot.slane %v805_v40, 1  ;;  %v835_v48 = vrot.slane %v681_v41, 5  ;;  %v812_v49 = vrot.slane %v681_v41, 1 }
 0x29a   : > { %v846_v52 = vrot.slane %v681_v41, 6  ;;  %v824_v56 = vrot.slane %v681_v41, 2  ;;  %v851_v57 = vrot.slane %v805_v40, 2  ;;  %v999_v40 = vld [vmem:[%s3037_s3 + $0x430] sm:$0xff] }
 0x29b   : > { %v1840_v7 = vpack.i.bf16 %v835_v48, %v807_v43  ;;  %v842_v51 = vsel %vm839_vm8, %v840_v44, %v841_v47  ;;  %v820_v54 = vsel %vm817_vm10, %v818_v50, %v819_v46  ;;  %v996_v43 = vld [vmem:[%s3037_s3 + $0x418] sm:$0xff]  ;;  %v995_v44 = vld [vmem:[%s3037_s3 + $0x410] sm:$0xff]  ;;  %v993_v46 = vld [vmem:[%s3037_s3 + $0x400] sm:$0xff] }
 0x29c   : > { %v1845_v53 = vpack.i.bf16 %v842_v51, %v812_v49  ;;  %v1850_v55 = vpack.i.bf16 %v846_v52, %v820_v54  ;;  %v852_v59 = vsel %vm428_vm5, %v850_v58, %v851_v57  ;;  %vm831_vm5 = vcmask 850944   ;;  %v1015_v48 = vld [vmem:[%s3038_s4] sm:$0x3] }
 0x29d   : > { %1841 = vrot.lane.b32.xlu0 %v1840_v7, %s1935_s22  ;;  %v1020_v2 = vrot.slane %v1015_v48, %v477_v34  ;;  %v1024_v9 = vrot.slane %v1015_v48, %v481_v36  ;;  %s323_s22 = sand.u32 1, %s1911_s10  }
 0x29e   : > { %1846 = vrot.lane.b32.xlu1 %v1845_v53, %s1924_s25 }
 0x2a1   : > { %1851 = vrot.lane.b32.xlu0 %v1850_v55, %s1936_s26  ;;  %s1668_s26 = sshll.u32 %s2014_s13, 4 }
 0x2a2   : > { %825 = vrot.lane.b32.xlu1 %v824_v56, %s1937_s28 }
 0x2a5   : > { %853 = vrot.lane.b32.xlu0 %v852_v59, %s1937_s28  ;;  %s324_s28 = scalar_lea.vmem [#allocation2], %s323_s22 }
 0x30f   : > { %v1842_v61 = vpop.permute.xlu0 %1841 }
 0x310   : > { %v1844_v62 = vunpack.i.h.bf16 %v1842_v61  ;;  %v1843_v63 = vunpack.i.l.bf16 %v1842_v61  ;;  %v1847_v0 = vpop.permute.xlu1 %1846 }
 0x311   : > { %v1849_v1 = vunpack.i.h.bf16 %v1847_v0  ;;  %v1848_v3 = vunpack.i.l.bf16 %v1847_v0 }
 0x312   : > { %v829_v4 = vsel %vm828_vm15, %v681_v41, %v1843_v63  ;;  %v856_v5 = vsel %vm828_vm15, %v2691_v28, %v1844_v62  ;;  %v1009_v28 = vld [vmem:[%s3037_s3 + $0x480] sm:$0xff]  ;;  %v998_v41 = vld [vmem:[%s3037_s3 + $0x428] sm:$0xff] }
 0x313   : > { %v1852_v6 = vpop.permute.xlu0 %1851  ;;  %v830_v8 = vsel %vm360_vm4, %v1843_v63, %v1848_v3  ;;  %v857_v11 = vsel %vm360_vm4, %v1844_v62, %v1849_v1  ;;  %v860_v18 = vsel %vm431_vm0, %v829_v4, %v856_v5 }
 0x314   : > { %v1854_v12 = vunpack.i.h.bf16 %v1852_v6  ;;  %v1853_v14 = vunpack.i.l.bf16 %v1852_v6  ;;  %v861_v15 = vsel %vm431_vm0, %v830_v8, %v857_v11  ;;  %v826_v17 = vpop.permute.xlu1 %825  ;;  %v1329_v6 = vld [vmem:[%s3039_s5 + $0xf0] sm:$0xff]  ;;  %v1328_v11 = vld [vmem:[%s3039_s5 + $0xe8] sm:$0xff] }
 0x315   : > { %1095 = vmatprep.mubr.f32.mxu1 %v861_v15  ;;  %v1313_v8 = vld [vmem:[%s3039_s5 + $0x70] sm:$0xff]  ;;  %v1338_v15 = vld [vmem:[%s3039_s5 + $0x138] sm:$0xff] }
 0x316   : > { %1096 = vmatmul.mubr.f32.vlgmr.msra.gmra.mxu1 %v860_v18  ;;  %v832_v10 = vsel %vm831_vm5, %v1848_v3, %v1853_v14  ;;  %v858_v21 = vsel %vm831_vm5, %v1849_v1, %v1854_v12  ;;  %v834_v26 = vsel %vm833_vm2, %v1853_v14, %v826_v17  ;;  %v1330_v1 = vld [vmem:[%s3039_s5 + $0xf8] sm:$0xff]  ;;  %v1327_v14 = vld [vmem:[%s3039_s5 + $0xe0] sm:$0xff] }
 0x317   : > { %1184 = vmatpush1.msra.mxu1 %v1013_v16  ;;  %v854_v24 = vpop.permute.xlu0 %853  ;;  %1237 = vmatprep.mubr.f32.mxu1 %v1938_v60  ;;  %v862_v13 = vsel %vm431_vm0, %v832_v10, %v858_v21  ;;  %v1314_v3 = vld [vmem:[%s3039_s5 + $0x78] sm:$0xff]  ;;  %v1311_v16 = vld [vmem:[%s3039_s5 + $0x60] sm:$0xff]  ;;  %v1325_v10 = vld [vmem:[%s3039_s5 + $0xd0] sm:$0xff] }
 0x318   : > { %v859_v27 = vsel %vm833_vm2, %v1854_v12, %v854_v24  ;;  %1185 = vmatprep.subr.mxu1 %v1012_v19  ;;  %v864_v47 = vsel %vm431_vm0, %v826_v17, %v854_v24  ;;  %v1312_v12 = vld [vmem:[%s3039_s5 + $0x68] sm:$0xff]  ;;  %v1337_v17 = vld [vmem:[%s3039_s5 + $0x130] sm:$0xff]  ;;  %v1326_v18 = vld [vmem:[%s3039_s5 + $0xd8] sm:$0xff] }
 0x319   : > { %1186 = vmatpush1.msra.mxu1 %v1011_v20  ;;  %v863_v29 = vsel %vm431_vm0, %v834_v26, %v859_v27  ;;  %v1336_v19 = vld [vmem:[%s3039_s5 + $0x128] sm:$0xff]  ;;  %v1310_v20 = vld [vmem:[%s3039_s5 + $0x58] sm:$0xff]  ;;  %v1335_v21 = vld [vmem:[%s3039_s5 + $0x120] sm:$0xff]  ;;  %vm1939_vm0 = vmmov 0  }
 0x31a   : > { %1187 = vmatprep.subr.mxu1 %v1010_v25  ;;  %1166 = vmatprep.mubr.f32.mxu0 %v863_v29  ;;  %v1309_v24 = vld [vmem:[%s3039_s5 + $0x50] sm:$0xff]  ;;  %v1324_v25 = vld [vmem:[%s3039_s5 + $0xc8] sm:$0xff]  ;;  %v1334_v26 = vld [vmem:[%s3039_s5 + $0x118] sm:$0xff] }
 0x31b   : > { %1188 = vmatpush1.msra.mxu1 %v1009_v28  ;;  %1167 = vmatmul.mubr.f32.vlgmr.msra.gmra.mxu0 %v862_v13  ;;  %v1308_v27 = vld [vmem:[%s3039_s5 + $0x48] sm:$0xff]  ;;  %v1323_v28 = vld [vmem:[%s3039_s5 + $0xc0] sm:$0xff]  ;;  %v1333_v29 = vld [vmem:[%s3039_s5 + $0x110] sm:$0xff] }
 0x31c   : > { %1189 = vmatprep.subr.mxu1 %v1008_v30  ;;  %1725 = vmatpush3.msra.mxu0 %v1338_v15  ;;  %v1307_v30 = vld [vmem:[%s3039_s5 + $0x40] sm:$0xff]  ;;  %v1322_v13 = vld [vmem:[%s3039_s5 + $0xb8] sm:$0xff] }
 0x31d   : > { %1190 = vmatpush1.msra.mxu1 %v1007_v31  ;;  %1726 = vmatprep.subr.mxu0 %v1938_v60  ;;  %v1306_v31 = vld [vmem:[%s3039_s5 + $0x38] sm:$0xff] }
 0x31e   : > { %1191 = vmatprep.subr.mxu1 %v1006_v32  ;;  %1727 = vmatpush3.msra.mxu0 %v1337_v17  ;;  %v1321_v32 = vld [vmem:[%s3039_s5 + $0xb0] sm:$0xff] }
 0x31f   : > { %1192 = vmatpush1.msra.mxu1 %v1005_v35  ;;  %1728 = vmatprep.subr.mxu0 %v1938_v60  ;;  %v1305_v35 = vld [vmem:[%s3039_s5 + $0x30] sm:$0xff] }
 0x320   : > { %1193 = vmatprep.subr.mxu1 %v1004_v22  ;;  %1729 = vmatpush3.msra.mxu0 %v1336_v19  ;;  %v1320_v22 = vld [vmem:[%s3039_s5 + $0xa8] sm:$0xff] }
 0x321   : > { %1194 = vmatpush1.msra.mxu1 %v1003_v37  ;;  %1730 = vmatprep.subr.mxu0 %v1938_v60  ;;  %v1304_v37 = vld [vmem:[%s3039_s5 + $0x28] sm:$0xff] }
 0x322   : > { %1195 = vmatprep.subr.mxu1 %v1002_v38  ;;  %1731 = vmatpush3.msra.mxu0 %v1335_v21  ;;  %v1319_v38 = vld [vmem:[%s3039_s5 + $0xa0] sm:$0xff] }
 0x323   : > { %1196 = vmatpush1.msra.mxu1 %v1001_v39  ;;  %1732 = vmatprep.subr.mxu0 %v1938_v60  ;;  %v1303_v39 = vld [vmem:[%s3039_s5 + $0x20] sm:$0xff] }
 0x324   : > { %1197 = vmatprep.subr.mxu1 %v1000_v23  ;;  %1733 = vmatpush3.msra.mxu0 %v1334_v26  ;;  %v1318_v23 = vld [vmem:[%s3039_s5 + $0x98] sm:$0xff] }
 0x325   : > { %1198 = vmatpush1.msra.mxu1 %v999_v40  ;;  %1734 = vmatprep.subr.mxu0 %v1938_v60  ;;  %v1302_v40 = vld [vmem:[%s3039_s5 + $0x18] sm:$0xff] }
 0x326   : > { %1199 = vmatprep.subr.mxu1 %v998_v41  ;;  %1735 = vmatpush3.msra.mxu0 %v1333_v29  ;;  %v1317_v41 = vld [vmem:[%s3039_s5 + $0x90] sm:$0xff] }
 0x327   : > { %1200 = vmatpush1.msra.mxu1 %v997_v42  ;;  %1736 = vmatprep.subr.mxu0 %v1938_v60  ;;  %v1301_v42 = vld [vmem:[%s3039_s5 + $0x10] sm:$0xff] }
 0x328   : > { %1201 = vmatprep.subr.mxu1 %v996_v43  ;;  %v1332_v43 = vld [vmem:[%s3039_s5 + $0x108] sm:$0xff]  ;;  %1740 = vmatprep.mubr.msk.f32.mxu0 %vm1939_vm0, %v1938_v60 }
 0x329   : > { %1202 = vmatpush1.msra.mxu1 %v995_v44  ;;  %v1316_v44 = vld [vmem:[%s3039_s5 + $0x88] sm:$0xff]  ;;  %1737 = vmatpush3.msra.mxu0 %v1332_v43 }
 0x32a   : > { %1203 = vmatprep.subr.mxu1 %v994_v45  ;;  %v1300_v45 = vld [vmem:[%s3039_s5 + $0x8] sm:$0xff]  ;;  %1738 = vmatprep.subr.mxu0 %v1938_v60 }
 0x32b   : > { %1204 = vmatpush1.msra.mxu1 %v993_v46  ;;  %v1331_v46 = vld [vmem:[%s3039_s5 + $0x100] sm:$0xff] }
 0x32c   : > { %1664 = vmatmul.mubr.msk.f32.vlgmr.msra.gmra.mxu1 %vm1027_vm3, %v864_v47  ;;  %1672 = vmatprep.subr.mxu1 %v1330_v1  ;;  %v1487_v1 = vld [vmem:[%s3041_s7 + $0x18] sm:$0xff] }
 0x32d   : > { %1673 = vmatpush3.msra.mxu1 %v1314_v3  ;;  %1739 = vmatpush3.msra.mxu0 %v1331_v46  ;;  %v1486_v3 = vld [vmem:[%s3041_s7 + $0x10] sm:$0xff] }
 0x32e   : > { %1674 = vmatprep.subr.mxu1 %v1329_v6  ;;  %1743 = vmatprep.subr.mxu0 %v1938_v60 }
 0x32f   : > { %1675 = vmatpush3.msra.mxu1 %v1313_v8 }
 0x330   : > { %1676 = vmatprep.subr.mxu1 %v1328_v11 }
 0x331   : > { %1677 = vmatpush3.msra.mxu1 %v1312_v12  ;;  %v1339_v12 = vld [vmem:[%s3040_s6] sm:$0x1] }
 0x332   : > { %1678 = vmatprep.subr.mxu1 %v1327_v14 }
 0x333   : > { %1679 = vmatpush3.msra.mxu1 %v1311_v16 }
 0x334   : > { %1680 = vmatprep.subr.mxu1 %v1326_v18 }
 0x335   : > { %1681 = vmatpush3.msra.mxu1 %v1310_v20 }
 0x336   : > { %1682 = vmatprep.subr.mxu1 %v1325_v10 }
 0x337   : > { %1683 = vmatpush3.msra.mxu1 %v1309_v24 }
 0x338   : > { %1684 = vmatprep.subr.mxu1 %v1324_v25 }
 0x339   : > { %1685 = vmatpush3.msra.mxu1 %v1308_v27 }
 0x33a   : > { %1686 = vmatprep.subr.mxu1 %v1323_v28 }
 0x33b   : > { %1687 = vmatpush3.msra.mxu1 %v1307_v30 }
 0x33c   : > { %1688 = vmatprep.subr.mxu1 %v1322_v13 }
 0x33d   : > { %1689 = vmatpush3.msra.mxu1 %v1306_v31 }
 0x33e   : > { %1690 = vmatprep.subr.mxu1 %v1321_v32 }
 0x33f   : > { %1691 = vmatpush3.msra.mxu1 %v1305_v35 }
 0x340   : > { %1692 = vmatprep.subr.mxu1 %v1320_v22 }
 0x341   : > { %1693 = vmatpush3.msra.mxu1 %v1304_v37 }
 0x342   : > { %1694 = vmatprep.subr.mxu1 %v1319_v38 }
 0x343   : > { %1695 = vmatpush3.msra.mxu1 %v1303_v39 }
 0x344   : > { %1696 = vmatprep.subr.mxu1 %v1318_v23 }
 0x345   : > { %1697 = vmatpush3.msra.mxu1 %v1302_v40 }
 0x346   : > { %1698 = vmatprep.subr.mxu1 %v1317_v41 }
 0x347   : > { %1699 = vmatpush3.msra.mxu1 %v1301_v42 }
 0x348   : > { %1700 = vmatprep.subr.mxu1 %v1316_v44 }
 0x349   : > { %1701 = vmatpush3.msra.mxu1 %v1300_v45 }
 0x3d6   : > { %v1097_v49 = vpop.f32.mrf.mxu1 }
 0x3d7   : > { %v1098_v51 = vadd.f32 %v1097_v49, %v1020_v2  ;;  %v1315_v49 = vld [vmem:[%s3039_s5 + $0x80] sm:$0xff] }
 0x3d8   : > { %v1099_v7 = vpop.f32.mrf.mxu1  ;;  %1702 = vmatprep.subr.mxu1 %v1315_v49 }
 0x3d9   : > { %v1100_v53 = vadd.f32 %v1099_v7, %v1024_v9 }
 0x3db   : > { %v1168_v50 = vpop.f32.mrf.mxu0 }
 0x3dc   : > { %v1169_v54 = vadd.f32 %v1168_v50, %v1098_v51  ;;  %v1299_v50 = vld [vmem:[%s3039_s5] sm:$0xff] }
 0x3dd   : > { %v1170_v52 = vpop.f32.mrf.mxu0  ;;  %1703 = vmatpush3.msra.mxu1 %v1299_v50 }
 0x3de   : > { %v1171_v56 = vadd.f32 %v1170_v52, %v1100_v53 }
 0x3ec   : > { %v1239_v55 = vpop.f32.mrf.mxu1 }
 0x3ed   : > { %v1240_v57 = vadd.f32 %v1239_v55, %v1169_v54 }
 0x3ee   : > { %v1241_v58 = vpop.f32.mrf.mxu1 }
 0x3ef   : > { %v1246_v59 = vrot.slane %v1240_v57, 4  ;;  %v1242_v61 = vadd.f32 %v1241_v58, %v1171_v56 }
 0x3f1   : > { %v1250_v62 = vmax.f32 %v1240_v57, %v1246_v59  ;;  %v1247_v63 = vrot.slane %v1242_v61, 4 }
 0x3f3   : > { %v1251_v0 = vmax.f32 %v1242_v61, %v1247_v63  ;;  %1253 = vrot.lane.b32.xlu1 %v1250_v62, %s1926_s29 }
 0x3f5   : > { %1258 = vrot.lane.b32.xlu0 %v1251_v0, %s1926_s29 }
 0x465   : > { %v1254_v33 = vpop.permute.xlu1 %1253 }
 0x466   : > { %v2814_v34 = vmax.f32 %v1250_v62, %v1254_v33  ;;  %v1490_v33 = vld [vmem:[%s3041_s7 + $0x30] sm:$0x3] }
 0x467   : > { %v1259_v36 = vpop.permute.xlu0 %1258 }
 0x468   : > { %1267 = vrot.lane.b32.xlu0 %v2814_v34, %s1927_s16  ;;  %1264 = vrot.lane.b32.xlu1 %v2814_v34, %s1926_s29  ;;  %v1261_v4 = vmax.f32 %v1250_v62, %v1259_v36  ;;  %v1262_v5 = vmax.f32 %v1251_v0, %v1259_v36  ;;  %s3049_s29 = smov 68   ;;  %v1488_v36 = vld [vmem:[%s3041_s7 + $0x20] sm:$0xff]  ;;  %s1595_s16 = sshll.u32 %s324_s28, 4  ;;  %s1596_s16 = int_to_ptr.vmem [resolvable:$true] %s1595_s16 }
 0x469   : > { %s1859_s21 = scalar_lea.vmem %s1596_s16, 16 }
 0x46a   : > { %p1860_p11 = scmp.ne.s32.totalorder %s1596_s16, %s1859_s21 }
 0x46c   : > { %1274 = vrot.lane.b32.xlu0 %v1262_v5, %s3049_s29  ;;  %1272 = vrot.lane.b32.xlu1 %v1261_v4, %s3049_s29  ;;  %v1485_v4 = vld [vmem:[%s3041_s7 + $0x8] sm:$0xff]  ;;  %v1484_v5 = vld [vmem:[%s3041_s7] sm:$0xff]  ;;  %p1861_p12 = pnand %p1860_p11, %p2031_p5 }
 0x46e   : > { %p1862_p13 = pneg %p1861_p12 }
 0x4da   : > { %v1268_v47 = vpop.permute.xlu0 %1267  ;;  %v1265_v48 = vpop.permute.xlu1 %1264 }
 0x4db   : > { %v1278_v2 = vsel %vm661_vm9, %v2814_v34, %v1265_v48  ;;  %vm1296_vm9 = vcmask 261120   ;;  %v1489_v34 = vld [vmem:[%s3041_s7 + $0x28] sm:$0xff] }
 0x4dc   : > { %v1279_v51 = vsel %vm665_vm12, %v1278_v2, %v1268_v47 }
 0x4de   : > { %v1275_v9 = vpop.permute.xlu0 %1274  ;;  %v1273_v7 = vpop.permute.xlu1 %1272 }
 0x4df   : > { %v1276_v52 = vsel %vm641_vm11, %v1273_v7, %v1275_v9 }
 0x4e0   : > { %v1280_v53 = vsel %vm669_vm14, %v1279_v51, %v1276_v52 }
 0x4e1   : > { %v1281_v54 = vmax.f32 %v1280_v53, 0.0 }
 0x4e3   : > { %v1287_v55 = vrot.slane %v1281_v54, 2  ;;  %v1283_v56 = vrot.slane %v1281_v54, 1  ;;  %v1291_v57 = vrot.slane %v1281_v54, 3 }
 0x4e5   : > { %1288 = vrot.lane.b32.xlu0 %v1287_v55, %s1940_s18  ;;  %1284 = vrot.lane.b32.xlu1 %v1283_v56, %s1941_s17  ;;  %s1593_s18 = scalar_lea.hbm %s3043_s9, %s1668_s26  ;;  %s1583_s17 = scalar_lea.sflag [#allocation3], %s323_s22 }
 0x4e9   : > { %1292 = vrot.lane.b32.xlu1 %v1291_v57, %s1924_s25  ;;  %s1863_s25 = sshll.u32 %s1942_s23, 4  ;;  %s1864_s25 = int_to_ptr.vmem [resolvable:$false] %s1863_s25 }
 0x4ea   : > { %s1865_s13 = scalar_lea.vmem %s1864_s25, 32  ;;  %p1866_p0 = scmp.lt.s32.totalorder %s1596_s16, %s1864_s25 }
 0x4eb   : > { %p1867_p1 = scmp.lt.s32.totalorder %s1865_s13, %s1859_s21 }
 0x4ed   : > { %p1868_p2 = por %p1867_p1, %p1866_p0 }
 0x4ef   : > { %p1869_p3 = pnand %p1868_p2, %p1862_p13 }
 0x557   : > { %v1285_v58 = vpop.permute.xlu1 %1284  ;;  %v1289_v59 = vpop.permute.xlu0 %1288 }
 0x558   : > { %v1297_v61 = vsel %vm1296_vm9, %v1285_v58, %v1289_v59  ;;  %v1295_v0 = vsel %vm673_vm1, %v1281_v54, %v1285_v58 }
 0x55b   : > { %v1293_v62 = vpop.permute.xlu1 %1292 }
 0x55c   : > { %1741 = vmatmul.mubr.msk.f32.vlgmr.msra.gmra.mxu0 %vm1340_vm6, %v1293_v62  ;;  %v1298_v63 = vsel %vm360_vm4, %v1297_v61, %v1293_v62  ;;  %vm1568_vm4 = vcmask 73728  }
 0x55d   : > { %1407 = vmatprep.mubr.f32.mxu1 %v1298_v63  ;;  %1757 = vmatprep.mubr.msk.f32.mxu0 %vm1939_vm0, %v1938_v60 }
 0x55e   : > { %1408 = vmatmul.mubr.f32.vlgmr.msra.gmra.mxu1 %v1295_v0  ;;  %1744 = vmatpush3.msk.msra.mxu0 %vm434_vm7, %v1490_v33 }
 0x55f   : > { %1745 = vmatprep.subr.mxu0 %v1938_v60 }
 0x560   : > { %1746 = vmatpush3.msra.mxu0 %v1489_v34 }
 0x561   : > { %1747 = vmatprep.subr.mxu0 %v1938_v60 }
 0x562   : > { %1748 = vmatpush3.msra.mxu0 %v1488_v36 }
 0x563   : > { %1749 = vmatprep.subr.mxu0 %v1938_v60 }
 0x564   : > { %1750 = vmatpush3.msra.mxu0 %v1487_v1 }
 0x565   : > { %1751 = vmatprep.subr.mxu0 %v1938_v60 }
 0x566   : > { %1752 = vmatpush3.msra.mxu0 %v1486_v3 }
 0x567   : > { %1753 = vmatprep.subr.mxu0 %v1938_v60 }
 0x568   : > { %1754 = vmatpush3.msra.mxu0 %v1485_v4 }
 0x569   : > { %1755 = vmatprep.subr.mxu0 %v1938_v60  ;;  %v1491_v60 = vld [vmem:[%s3042_s8] sm:$0x1] }
 0x56a   : > { %1756 = vmatpush3.msra.mxu0 %v1484_v5 }
 0x61c   : > { %v1479_v6 = vpop.f32.mrf.mxu0 }
 0x61e   : > { %v1704_v8 = vpop.f32.mrf.mxu1  ;;  %v1742_v11 = vpop.f32.mrf.mxu0 }
 0x620   : > { %v1705_v14 = vpop.f32.mrf.mxu1 }
 0x621   : > { %v1706_v15 = vadd.f32 %v1705_v14, %v1704_v8 }
 0x623   : > { %v1410_v16 = vadd.f32 %v1706_v15, %v1339_v12 }
 0x625   : > { %v1480_v17 = vadd.f32 %v1479_v6, %v1410_v16 }
 0x627   : > { %v1483_v18 = vmax.f32 %v1480_v17, 0.0 }
 0x629   : > { %1758 = vmatmul.mubr.msk.f32.vlgmr.msra.gmra.mxu0 %vm667_vm13, %v1483_v18 }
 0x6e9   : > { %v1564_v19 = vpop.f32.mrf.mxu0 }
 0x6ea   : > { %v1565_v20 = vadd.f32 %v1564_v19, %v1491_v60 }
 0x6eb   : > { %v1759_v10 = vpop.f32.mrf.mxu0 }
 0x6ec   : > { %v1569_v21 = vsel %vm1568_vm4, %v1565_v20, -inf }
 0x6ed   : > { %1570 = vmax.xlane.f32.xlu0 %v1569_v21 }
 0x776   : > { %v1571_v24 = vpop.xlane.xlu0 %1570 }
 0x777   : > { %v1572_v25 = vsub.f32 %v1565_v20, %v1571_v24 }
 0x779   : > { %v1573_v26 = vmul.f32 1.442695, %v1572_v25 }
 0x77b   : > { %1855 = vpow2.f32 %v1573_v26 }
 0x788   : > { %v1856_v27 = vpop.eup %1855 }
 0x789   : > { %v1575_v28 = vsel %vm1568_vm4, %v1856_v27, 0.0 }
 0x78a   : > { %1576 = vadd.xlane.f32.xlu1 %v1575_v28 }
 0x813   : > { %v1577_v29 = vpop.xlane.xlu1 %1576 }
 0x814   : > { %1857 = vlog2.f32 %v1577_v29 }
 0x821   : > { %v1858_v30 = vpop.eup %1857 }
 0x822   : > { %v1579_v13 = vmul.f32 0.6931472, %v1858_v30 }
 0x824   : > { %v1580_v31 = vsub.f32 %v1572_v25, %v1579_v13 }
 0x826   : > { %1581 = vst.msk [vmem:[%s324_s28] sm:$0x1] %vm1568_vm4, %v1580_v31 }
 0x827   : > { %1872 = shalt.err (!%p1869_p3)
}
 0x828   : > { %s1873_s27 = scalar_lea.hbm %s1593_s18, 16  ;;  %s1877_s26 = scalar_lea.hbm %s3043_s9, 32 }
 0x829   : > { %p1874_p4 = scmp.ne.s32.totalorder %s1593_s18, %s1873_s27  ;;  %p1878_p9 = scmp.lt.s32.totalorder %s1593_s18, %s3043_s9 }
 0x82a   : > { %p1879_p10 = scmp.lt.s32.totalorder %s1877_s26, %s1873_s27 }
 0x82b   : > { %p1875_p7 = pnand %p1874_p4, %p2031_p5 }
 0x82c   : > { %p1880_p11 = por %p1879_p10, %p1878_p9 }
 0x82d   : > { %p1876_p8 = pneg %p1875_p7 }
 0x82f   : > { %p1881_p12 = pnand %p1880_p11, %p1876_p8 }
 0x831   : > { %1884 = shalt.err (!%p1881_p12)
}
 0x832   : > { %1760 = dma.vmem_to_hbm [thread:$0]  (%p2031_p5), %s1596_s16, 16, %s1593_s18, %s1583_s17  }
 0x833 PF: > { %p1766_p13 = scmp.ge.s32.totalorder %s1919_s12, 2  ;;  %s1607_s29 = sand.u32 1, %s1907_s30  }
 0x834   : > { %s1608_s21 = scalar_lea.sflag [#allocation3], %s1607_s29 }
 0x835   : > { %p1763_p0 = pnand %p1766_p13, %p2035_p6 }
 0x837   : > { %p1764_p1 = pneg %p1763_p0 }
 0x839   : > { %1902 = dma.done.wait (%p1764_p1), %s1608_s21, 16  }
 0x83a   : > { %1904 = vsyncadd (%p1764_p1), %s1608_s21, 4294967280  ;;  %s3050_s23 = sld [smem:[#allocation5_spill]]  ;;  %p19_p2 = scmp.ge.s32.totalorder %s2018_s15, 4  }
 0x83b   : > { %s3051_s30 = smov %s1911_s10  ;;  %s3052_s10 = smov %s1915_s11 }
 0x83c   : > { %s3054_s12 = smov %s2018_s15  ;;  %21 = sbr.rel (!%p19_p2) target bundleno = 3 (0x3), region = 94 }
 0x840   : > { %s3053_s11 = smov %s3050_s23 }
 0x841   :  { %1612 = vsyncpa [#allocation3], 1 }
 0x842   :  { %1614 = vsyncpa [#allocation3 + $0x1], 1 }

</bundles_post_ra>
